<compile_context>
chip_gen: v7x
topology: tpu7x:2x2x1
jax: 0.10.0
libtpu: 0.0.40
codegen_flags: <defaults>
</compile_context>

<pallas_src>
import functools
import math

import jax
import jax.numpy as jnp
from jax.experimental import pallas as pl
from jax.experimental.pallas import tpu as pltpu


class NaNExceptionActor(Exception):
    pass


LANE = 128            # TPU lane width; all feature dims are padded to a multiple of this.
DEFAULT_TILE_B = 128  # batch tile: 2 bufs * (x + probs) * 128 rows * 128 lanes * 4B ~ 0.5 MiB
                      # + 3 resident 128x128 f32 weights (192 KiB)  << 32 MiB scoped VMEM.


def _round_up(n, m):
    return ((n + m - 1) // m) * m


def actor_kernel(x_ref, w1_ref, b1_ref, w2_ref, b2_ref, w3_ref, b3_ref,
                 probs_ref, flag_ref, *, valid_out_dim):
    # fc1 -> ReLU (MXU matmul, f32 accumulate; bias add fused in the epilogue)
    h1 = jnp.dot(x_ref[...], w1_ref[...], preferred_element_type=jnp.float32)
    h1 = jnp.maximum(h1 + b1_ref[...], 0.0)

    # fc2 -> ReLU
    h2 = jnp.dot(h1, w2_ref[...], preferred_element_type=jnp.float32)
    h2 = jnp.maximum(h2 + b2_ref[...], 0.0)

    # fc3 logits (lane-padded to 128; padded weight/bias lanes are exactly zero)
    logits = jnp.dot(h2, w3_ref[...], preferred_element_type=jnp.float32) + b3_ref[...]

    # NaN/inf guard computed in-kernel (per-row flag) so no host sync is needed on
    # the hot path. Padded lanes are exactly 0 unless the hidden activations already
    # blew up, so checking the padded row == checking the valid lanes.
    bad = jnp.isnan(logits) | jnp.isinf(logits)
    flag_ref[...] = jnp.max(bad.astype(jnp.float32), axis=-1, keepdims=True)

    # Mask padded logit lanes to -inf so they carry no probability mass.
    col = jax.lax.broadcasted_iota(jnp.int32, logits.shape, dimension=1)
    logits = jnp.where(col < valid_out_dim, logits, -jnp.inf)

    # Numerically stable softmax with an *exact* division (matches nn.Softmax).
    m = jnp.max(logits, axis=-1, keepdims=True)
    e = jnp.exp(logits - m)
    denom = jnp.sum(e, axis=-1, keepdims=True)
    probs_ref[...] = e / denom


def actor_forward(x, params, *, tile_b=DEFAULT_TILE_B):
    """Batched Actor forward pass in a single Pallas kernel.

    x: (B, input_dim) float32 (unpadded features; many env/rollout steps stacked)
    params: lane-padded params from make_actor_params
    returns: (probs, bad_flag)
      probs:    (B, output_dim) float32 softmax probabilities
      bad_flag: device scalar bool, True iff any fc3 logit was NaN/inf
                (check it off the hot path — no implicit host sync here)
    """
    B, input_dim = x.shape
    in_pad = params["w1"].shape[0]
    hid_pad = params["w1"].shape[1]
    out_pad = params["w3"].shape[1]
    out_dim = int(params["out_dim"])

    b_pad = _round_up(max(B, 1), tile_b)
    x_p = jnp.pad(x.astype(jnp.float32), ((0, b_pad - B), (0, in_pad - input_dim)))

    grid = (b_pad // tile_b,)
    kernel = functools.partial(actor_kernel, valid_out_dim=out_dim)

    probs_pad, flag = pl.pallas_call(
        kernel,
        grid=grid,
        out_shape=(
            jax.ShapeDtypeStruct((b_pad, out_pad), jnp.float32),
            jax.ShapeDtypeStruct((b_pad, 1), jnp.float32),
        ),
        in_specs=[
            pl.BlockSpec((tile_b, in_pad), lambda i: (i, 0)),     # x tile (pipelined)
            pl.BlockSpec((in_pad, hid_pad), lambda i: (0, 0)),    # w1 (resident)
            pl.BlockSpec((1, hid_pad), lambda i: (0, 0)),         # b1
            pl.BlockSpec((hid_pad, hid_pad), lambda i: (0, 0)),   # w2
            pl.BlockSpec((1, hid_pad), lambda i: (0, 0)),         # b2
            pl.BlockSpec((hid_pad, out_pad), lambda i: (0, 0)),   # w3
            pl.BlockSpec((1, out_pad), lambda i: (0, 0)),         # b3
        ],
        out_specs=(
            pl.BlockSpec((tile_b, out_pad), lambda i: (i, 0)),    # lane-dense probs
            pl.BlockSpec((tile_b, 1), lambda i: (i, 0)),          # per-row NaN/inf flag
        ),
        compiler_params=pltpu.CompilerParams(
            dimension_semantics=("parallel",)),                   # both TCs on v7x
    )(
        x_p,
        params["w1"], params["b1"],
        params["w2"], params["b2"],
        params["w3"], params["b3"],
    )

    probs = probs_pad[:B, :out_dim]
    bad_flag = jnp.max(flag[:B]) > 0.0
    return probs, bad_flag


def init_linear(key, fan_in, fan_out, fan_in_pad, fan_out_pad):
    """nn.Linear default init U(-1/sqrt(fan_in), 1/sqrt(fan_in)), stored lane-padded
    (zeros in the padded rows/cols) so no per-call reshapes are needed."""
    kw, kb = jax.random.split(key)
    bound = 1.0 / math.sqrt(fan_in)
    w = jax.random.uniform(kw, (fan_in, fan_out), jnp.float32, -bound, bound)
    b = jax.random.uniform(kb, (1, fan_out), jnp.float32, -bound, bound)
    w = jnp.pad(w, ((0, fan_in_pad - fan_in), (0, fan_out_pad - fan_out)))
    b = jnp.pad(b, ((0, 0), (0, fan_out_pad - fan_out)))
    return w, b


def make_actor_params(key, input_dim, output_dim, hidden=64):
    in_pad = _round_up(input_dim, LANE)
    hid_pad = _round_up(hidden, LANE)
    out_pad = _round_up(output_dim, LANE)
    k1, k2, k3 = jax.random.split(key, 3)
    w1, b1 = init_linear(k1, input_dim, hidden, in_pad, hid_pad)
    w2, b2 = init_linear(k2, hidden, hidden, hid_pad, hid_pad)
    w3, b3 = init_linear(k3, hidden, output_dim, hid_pad, out_pad)
    return {"w1": w1, "b1": b1, "w2": w2, "b2": b2, "w3": w3, "b3": b3,
            "input_dim": input_dim, "hidden": hidden, "out_dim": output_dim}


def ref_forward(x, p):
    """Plain-JAX reference of the original (unpadded) module math."""
    in_d, hid, out = p["input_dim"], p["hidden"], p["out_dim"]
    w1, b1 = p["w1"][:in_d, :hid], p["b1"][:, :hid]
    w2, b2 = p["w2"][:hid, :hid], p["b2"][:, :hid]
    w3, b3 = p["w3"][:hid, :out], p["b3"][:, :out]
    h1 = jnp.maximum(x @ w1 + b1, 0.0)
    h2 = jnp.maximum(h1 @ w2 + b2, 0.0)
    logits = h2 @ w3 + b3
    return jax.nn.softmax(logits, axis=-1)


if __name__ == "__main__":
    # Shapes consistent with the module: output_dim = 5 darts * 3 action types = 15.
    # Many rollout steps are batched into one kernel call (B = 256, two batch tiles).
    INPUT_DIM = 32
    OUTPUT_DIM = 15
    B = 256

    key = jax.random.PRNGKey(0)
    kx, kp = jax.random.split(key)

    x = jax.random.normal(kx, (B, INPUT_DIM), jnp.float32)
    params = make_actor_params(kp, INPUT_DIM, OUTPUT_DIM)

    probs, bad_flag = actor_forward(x, params)
    probs = jax.block_until_ready(probs)

    # NaN/inf guard (mirrors Actor.forward): flag is computed inside the kernel and
    # only inspected here, once, off the per-call hot path.
    if bool(bad_flag):
        raise NaNExceptionActor("Les couches cachées renvoient nan ou infinies")

    # Sanity: softmax rows sum to 1 (exact division in-kernel -> tight tolerance).
    row_sums = jnp.sum(probs, axis=-1)
    assert jnp.allclose(row_sums, 1.0, atol=1e-5), row_sums

    # Cross-check against the plain-JAX reference of the same (unpadded) math.
    ref = ref_forward(x, params)
    assert probs.shape == (B, OUTPUT_DIM)
    assert jnp.allclose(probs, ref, atol=1e-5, rtol=1e-5), float(
        jnp.max(jnp.abs(probs - ref)))

    print("KERNEL_OK")
</pallas_src>

<mosaic_0001>
module attributes {stable_mosaic.version = 11 : i64} {
  func.func @actor_kernel(%arg0: i32, %arg1: memref<128x128xf32, #tpu.memory_space<vmem>>, %arg2: memref<128x128xf32, #tpu.memory_space<vmem>>, %arg3: memref<1x128xf32, #tpu.memory_space<vmem>>, %arg4: memref<128x128xf32, #tpu.memory_space<vmem>>, %arg5: memref<1x128xf32, #tpu.memory_space<vmem>>, %arg6: memref<128x128xf32, #tpu.memory_space<vmem>>, %arg7: memref<1x128xf32, #tpu.memory_space<vmem>>, %arg8: memref<128x128xf32, #tpu.memory_space<vmem>>, %arg9: memref<128x1xf32, #tpu.memory_space<vmem>>) attributes {dimension_semantics = [#tpu.dimension_semantics<parallel>], iteration_bounds = array<i64: 2>, scalar_prefetch = 0 : i64, scratch_operands = 0 : i64, tpu.core_type = #tpu.core_type<tc>, window_params = [{transform_indices = @transform_0, window_bounds = array<i64: 128, 128>}, {pipeline_mode = #tpu.pipeline_mode<synchronous>, transform_indices = @transform_1, window_bounds = array<i64: 128, 128>}, {pipeline_mode = #tpu.pipeline_mode<synchronous>, transform_indices = @transform_2, window_bounds = array<i64: 1, 128>}, {pipeline_mode = #tpu.pipeline_mode<synchronous>, transform_indices = @transform_3, window_bounds = array<i64: 128, 128>}, {pipeline_mode = #tpu.pipeline_mode<synchronous>, transform_indices = @transform_4, window_bounds = array<i64: 1, 128>}, {pipeline_mode = #tpu.pipeline_mode<synchronous>, transform_indices = @transform_5, window_bounds = array<i64: 128, 128>}, {pipeline_mode = #tpu.pipeline_mode<synchronous>, transform_indices = @transform_6, window_bounds = array<i64: 1, 128>}, {transform_indices = @transform_7, window_bounds = array<i64: 128, 128>}, {transform_indices = @transform_8, window_bounds = array<i64: 128, 1>}]} {
    %c0 = arith.constant 0 : index
    %c0_0 = arith.constant 0 : index
    %0 = vector.load %arg1[%c0, %c0_0] : memref<128x128xf32, #tpu.memory_space<vmem>>, vector<128x128xf32>
    %c0_1 = arith.constant 0 : index
    %c0_2 = arith.constant 0 : index
    %1 = vector.load %arg2[%c0_1, %c0_2] : memref<128x128xf32, #tpu.memory_space<vmem>>, vector<128x128xf32>
    %cst = arith.constant dense<0.000000e+00> : vector<128x128xf32>
    %2 = tpu.matmul %0, %1, %cst {dimension_numbers = #tpu.dot_dimension_numbers<[1], [0], [0], [1], [0, 0, 1, 1], [], []>} : vector<128x128xf32>, vector<128x128xf32>, vector<128x128xf32> -> vector<128x128xf32>
    %c0_3 = arith.constant 0 : index
    %c0_4 = arith.constant 0 : index
    %3 = vector.load %arg3[%c0_3, %c0_4] : memref<1x128xf32, #tpu.memory_space<vmem>>, vector<1x128xf32>
    %4 = vector.broadcast %3 : vector<1x128xf32> to vector<128x128xf32>
    %5 = arith.addf %2, %4 : vector<128x128xf32>
    %cst_5 = arith.constant 0.000000e+00 : f32
    %6 = vector.broadcast %cst_5 : f32 to vector<128x128xf32>
    %7 = arith.maximumf %5, %6 : vector<128x128xf32>
    %c0_6 = arith.constant 0 : index
    %c0_7 = arith.constant 0 : index
    %8 = vector.load %arg4[%c0_6, %c0_7] : memref<128x128xf32, #tpu.memory_space<vmem>>, vector<128x128xf32>
    %cst_8 = arith.constant dense<0.000000e+00> : vector<128x128xf32>
    %9 = tpu.matmul %7, %8, %cst_8 {dimension_numbers = #tpu.dot_dimension_numbers<[1], [0], [0], [1], [0, 0, 1, 1], [], []>} : vector<128x128xf32>, vector<128x128xf32>, vector<128x128xf32> -> vector<128x128xf32>
    %c0_9 = arith.constant 0 : index
    %c0_10 = arith.constant 0 : index
    %10 = vector.load %arg5[%c0_9, %c0_10] : memref<1x128xf32, #tpu.memory_space<vmem>>, vector<1x128xf32>
    %11 = vector.broadcast %10 : vector<1x128xf32> to vector<128x128xf32>
    %12 = arith.addf %9, %11 : vector<128x128xf32>
    %cst_11 = arith.constant 0.000000e+00 : f32
    %13 = vector.broadcast %cst_11 : f32 to vector<128x128xf32>
    %14 = arith.maximumf %12, %13 : vector<128x128xf32>
    %c0_12 = arith.constant 0 : index
    %c0_13 = arith.constant 0 : index
    %15 = vector.load %arg6[%c0_12, %c0_13] : memref<128x128xf32, #tpu.memory_space<vmem>>, vector<128x128xf32>
    %cst_14 = arith.constant dense<0.000000e+00> : vector<128x128xf32>
    %16 = tpu.matmul %14, %15, %cst_14 {dimension_numbers = #tpu.dot_dimension_numbers<[1], [0], [0], [1], [0, 0, 1, 1], [], []>} : vector<128x128xf32>, vector<128x128xf32>, vector<128x128xf32> -> vector<128x128xf32>
    %c0_15 = arith.constant 0 : index
    %c0_16 = arith.constant 0 : index
    %17 = vector.load %arg7[%c0_15, %c0_16] : memref<1x128xf32, #tpu.memory_space<vmem>>, vector<1x128xf32>
    %18 = vector.broadcast %17 : vector<1x128xf32> to vector<128x128xf32>
    %19 = arith.addf %16, %18 : vector<128x128xf32>
    %20 = arith.cmpf one, %19, %19 : vector<128x128xf32>
    %21 = math.absf %19 : vector<128x128xf32>
    %cst_17 = arith.constant 0x7F800000 : f32
    %22 = vector.broadcast %cst_17 : f32 to vector<128x128xf32>
    %23 = arith.cmpf oeq, %21, %22 : vector<128x128xf32>
    %24 = arith.ori %20, %23 : vector<128x128xi1>
    %25 = arith.extui %24 : vector<128x128xi1> to vector<128x128xi32>
    %26 = arith.sitofp %25 : vector<128x128xi32> to vector<128x128xf32>
    %cst_18 = arith.constant dense<0xFF800000> : vector<128xf32>
    %27 = vector.multi_reduction <maximumf>, %26, %cst_18 [1] : vector<128x128xf32> to vector<128xf32>
    %28 = vector.shape_cast %27 : vector<128xf32> to vector<128x1xf32>
    %c0_19 = arith.constant 0 : index
    %c0_20 = arith.constant 0 : index
    %29 = vector.load %arg9[%c0_19, %c0_20] : memref<128x1xf32, #tpu.memory_space<vmem>>, vector<128x1xf32>
    tpu.vector_store %arg9[%c0_19, %c0_20], %28 {strides = array<i32>} : memref<128x1xf32, #tpu.memory_space<vmem>>, vector<128x1xf32>,
    %30 = tpu.iota {dimensions = array<i32: 1>} : vector<128x128xi32>
    %c15_i32 = arith.constant 15 : i32
    %31 = vector.broadcast %c15_i32 : i32 to vector<128x128xi32>
    %32 = arith.cmpi slt, %30, %31 : vector<128x128xi32>
    %cst_21 = arith.constant 0xFF800000 : f32
    %33 = vector.broadcast %cst_21 : f32 to vector<128x128xf32>
    %34 = arith.select %32, %19, %33 : vector<128x128xi1>, vector<128x128xf32>
    %cst_22 = arith.constant dense<0xFF800000> : vector<128xf32>
    %35 = vector.multi_reduction <maximumf>, %34, %cst_22 [1] : vector<128x128xf32> to vector<128xf32>
    %36 = vector.shape_cast %35 : vector<128xf32> to vector<128x1xf32>
    %37 = vector.broadcast %36 : vector<128x1xf32> to vector<128x128xf32>
    %38 = arith.subf %34, %37 : vector<128x128xf32>
    %39 = math.exp %38 : vector<128x128xf32>
    %cst_23 = arith.constant dense<0.000000e+00> : vector<128xf32>
    %40 = vector.multi_reduction <add>, %39, %cst_23 [1] : vector<128x128xf32> to vector<128xf32>
    %41 = vector.shape_cast %40 : vector<128xf32> to vector<128x1xf32>
    %42 = vector.broadcast %41 : vector<128x1xf32> to vector<128x128xf32>
    %43 = arith.divf %39, %42 : vector<128x128xf32>
    %c0_24 = arith.constant 0 : index
    %c0_25 = arith.constant 0 : index
    %44 = vector.load %arg8[%c0_24, %c0_25] : memref<128x128xf32, #tpu.memory_space<vmem>>, vector<128x128xf32>
    tpu.vector_store %arg8[%c0_24, %c0_25], %43 {strides = array<i32>} : memref<128x128xf32, #tpu.memory_space<vmem>>, vector<128x128xf32>,
    return
  }
  func.func @transform_0(%arg0: i32) -> (i32, i32) {
    %c0_i32 = arith.constant 0 : i32
    %c0_i32_0 = arith.constant 0 : i32
    return %arg0, %c0_i32 : i32, i32
  }
  func.func @transform_1(%arg0: i32) -> (i32, i32) {
    %c0_i32 = arith.constant 0 : i32
    %c0_i32_0 = arith.constant 0 : i32
    %c0_i32_1 = arith.constant 0 : i32
    return %c0_i32, %c0_i32_0 : i32, i32
  }
  func.func @transform_2(%arg0: i32) -> (i32, i32) {
    %c0_i32 = arith.constant 0 : i32
    %c0_i32_0 = arith.constant 0 : i32
    %c0_i32_1 = arith.constant 0 : i32
    return %c0_i32, %c0_i32_0 : i32, i32
  }
  func.func @transform_3(%arg0: i32) -> (i32, i32) {
    %c0_i32 = arith.constant 0 : i32
    %c0_i32_0 = arith.constant 0 : i32
    %c0_i32_1 = arith.constant 0 : i32
    return %c0_i32, %c0_i32_0 : i32, i32
  }
  func.func @transform_4(%arg0: i32) -> (i32, i32) {
    %c0_i32 = arith.constant 0 : i32
    %c0_i32_0 = arith.constant 0 : i32
    %c0_i32_1 = arith.constant 0 : i32
    return %c0_i32, %c0_i32_0 : i32, i32
  }
  func.func @transform_5(%arg0: i32) -> (i32, i32) {
    %c0_i32 = arith.constant 0 : i32
    %c0_i32_0 = arith.constant 0 : i32
    %c0_i32_1 = arith.constant 0 : i32
    return %c0_i32, %c0_i32_0 : i32, i32
  }
  func.func @transform_6(%arg0: i32) -> (i32, i32) {
    %c0_i32 = arith.constant 0 : i32
    %c0_i32_0 = arith.constant 0 : i32
    %c0_i32_1 = arith.constant 0 : i32
    return %c0_i32, %c0_i32_0 : i32, i32
  }
  func.func @transform_7(%arg0: i32) -> (i32, i32) {
    %c0_i32 = arith.constant 0 : i32
    %c0_i32_0 = arith.constant 0 : i32
    return %arg0, %c0_i32 : i32, i32
  }
  func.func @transform_8(%arg0: i32) -> (i32, i32) {
    %c0_i32 = arith.constant 0 : i32
    %c0_i32_0 = arith.constant 0 : i32
    return %arg0, %c0_i32 : i32, i32
  }
}

</mosaic_0001>

<bundles_post_ra>
// kernel: tpu_custom_call.1
= control target key start
LH: loop header
LB: loop body
LE: loop exit
PB: predicated region body
PF: predicated region fallthrough
CT: control target
= control target key end

     0   :  { %14 = vsyncpa [#allocation3], 0  ;;  %s2908_s0 = inlined_call_operand.hbm [shape: f32[256,128], index: 0, kind: input, shape index: {}]   ;;  %s2909_s1 = inlined_call_operand.hbm [shape: f32[128,128], index: 1, kind: input, shape index: {}]   ;;  %s2910_s2 = inlined_call_operand.vmem [shape: f32[1,128], index: 2, kind: input, shape index: {}]   ;;  %s2911_s3 = inlined_call_operand.hbm [shape: f32[128,128], index: 3, kind: input, shape index: {}]   ;;  %s2912_s4 = inlined_call_operand.vmem [shape: f32[1,128], index: 4, kind: input, shape index: {}]   ;;  %s2913_s5 = inlined_call_operand.hbm [shape: f32[128,128], index: 5, kind: input, shape index: {}]   ;;  %s2914_s6 = inlined_call_operand.vmem [shape: f32[1,128], index: 6, kind: input, shape index: {}]   ;;  %s2915_s7 = inlined_call_operand.hbm [shape: f32[256,128], index: 7, kind: output, shape index: {0}]   ;;  %s2916_s8 = inlined_call_operand.vmem [shape: f32[256,1], index: 8, kind: output, shape index: {1}]  }
   0x1   :  { %16 = vsyncpa [#allocation3 + $0x1], 0 }
   0x2   :  { %17 = vsyncpa [#allocation6], 0 }
   0x3   :  { %18 = vsyncpa [#allocation9], 0 }
   0x4   :  { %19 = vsyncpa [#allocation4], 0 }
   0x5   :  { %21 = vsyncpa [#allocation4 + $0x1], 0  ;;  %s2220_s27 = smov 0   ;;  %s2222_s28 = smov 0  }
   0x6   :  { %s2224_s29 = smov 0   ;;  %s2226_s30 = smov 0  }
   0x7 LB: > { %2922 = sst [smem:[#allocation15_spill]] %s2151_s27  ;;  %s2241_s9 = sadd.s32 4294967295, %s2163_s30   ;;  %s2163_s30 = sphi %s2226_s30, %s2951_s30   ;;  %s2159_s29 = sphi %s2224_s29, %s2950_s29   ;;  %s2155_s28 = sphi %s2222_s28, %s2949_s28   ;;  %s2151_s27 = sphi %s2220_s27, %s2948_s27  }
   0x8   : > { %s1410_s10 = sadd.s32 4294967294, %s2163_s30   ;;  %p47_p0 = scmp.ne.s32.totalorder %s2155_s28, %s2151_s27 }
   0x9   : > { %p2917_p1 = scmp.eq.s32.totalorder %s2241_s9, 0  ;;  %p203_p3 = scmp.eq.s32.totalorder %s1410_s10, 1 }
   0xa   : > { %p1411_p5 = scmp.ge.s32.totalorder %s2163_s30, 1  ;;  %p236_p7 = scmp.lt.s32.totalorder %s2163_s30, 3 }
   0xb   : > { %p2250_p4 = por %p2917_p1, %p47_p0  ;;  %p2255_p6 = por %p203_p3, %p47_p0 }
   0xc   : > { %p2260_p8 = pnand %p1411_p5, %p236_p7  ;;  %s2165_s14 = smov [#allocation5]  }
   0xd   : > { %s2923_s11 = scalar_select %p2250_p4, 1, 0 }
   0xe   : > { %s2924_s12 = scalar_select %p2255_p6, 1, 0 }
   0xf   : > { %s2926_s13 = scalar_select %p2260_p8, 1, 0 }
  0x10   : > { %2925 = sst [smem:[#allocation16_spill]] %s2924_s12  ;;  %s248_s15 = sshll.u32 %s2165_s14, 4  ;;  %s2264_s15 = int_to_ptr.vmem [resolvable:$true] %s248_s15 }
  0x11   : > { %p1845_p9 = pneg %p2260_p8  ;;  %s2166_s17 = smov [#allocation7]  }
  0x12   : > { %s264_s18 = sshll.u32 %s2166_s17, 4  ;;  %s2167_s19 = smov [#allocation8]   ;;  %s2275_s18 = int_to_ptr.vmem [resolvable:$true] %s264_s18 }
  0x13   : > { %p2271_p11 = pnand %p1845_p9, %p2917_p1  ;;  %s2277_s20 = sshll.u32 %s2167_s19, 4  ;;  %s281_s20 = int_to_ptr.vmem [resolvable:$true] %s2277_s20 }
  0x14   : > { %s1975_s23 = scalar_lea.hbm %s2909_s1, 2048 }
  0x15   : > { %p1976_p12 = scmp.ne.s32.totalorder %s2909_s1, %s1975_s23  ;;  %p2287_p13 = pneg %p2271_p11 }
  0x16   : > { %p1982_p5 = scmp.lt.u32.totalorder %s1975_s23, %s2909_s1 }
  0x17   : > { %p1978_p0 = pnand %p2287_p13, %p1976_p12 }
  0x19   : > { %p1979_p3 = pneg %p1978_p0 }
  0x1b   : > { %p1984_p7 = pnand %p1982_p5, %p1979_p3 }
  0x1d   : > { %1987 = shalt.err (!%p1984_p7)
}
  0x1e   : > { %s1988_s17 = scalar_lea.vmem %s2264_s15, 2048  ;;  %p1996_p2 = scmp.lt.s32.totalorder %s2264_s15, %s2264_s15 }
  0x1f   : > { %p1989_p9 = scmp.ne.s32.totalorder %s2264_s15, %s1988_s17  ;;  %p1997_p6 = scmp.lt.s32.totalorder %s1988_s17, %s1988_s17 }
  0x21   : > { %p1991_p10 = pnand %p1989_p9, %p2287_p13  ;;  %p1998_p12 = por %p1997_p6, %p1996_p2 }
  0x23   : > { %p1992_p1 = pneg %p1991_p10 }
  0x25   : > { %p1999_p0 = pnand %p1998_p12, %p1992_p1 }
  0x27   : > { %2002 = shalt.err (!%p1999_p0)
}
  0x28   : > { %s2168_s19 = smov 128   ;;  %s2169_s21 = smov 8  }
  0x29   : > { %1848 = dma.hbm_to_vmem [thread:$0]  (!%p2271_p11), %s2909_s1, 2048, %s2264_s15, [#allocation6], %s2168_s19, %s2168_s19, %s2169_s21  }
  0x2a   : > { %s2003_s10 = scalar_lea.hbm %s2911_s3, 2048 }
  0x2b   : > { %p2004_p1 = scmp.ne.s32.totalorder %s2911_s3, %s2003_s10  ;;  %p2010_p10 = scmp.lt.u32.totalorder %s2003_s10, %s2911_s3 }
  0x2d   : > { %p2006_p2 = pnand %p2004_p1, %p2287_p13 }
  0x2f   : > { %p2007_p6 = pneg %p2006_p2 }
  0x31   : > { %p2012_p3 = pnand %p2010_p10, %p2007_p6 }
  0x33   : > { %2015 = shalt.err (!%p2012_p3)
}
  0x34   : > { %s2016_s15 = scalar_lea.vmem %s2275_s18, 2048  ;;  %p2024_p12 = scmp.lt.s32.totalorder %s2275_s18, %s2275_s18 }
  0x35   : > { %p2017_p5 = scmp.ne.s32.totalorder %s2275_s18, %s2016_s15  ;;  %p2025_p0 = scmp.lt.s32.totalorder %s2016_s15, %s2016_s15 }
  0x37   : > { %p2019_p7 = pnand %p2017_p5, %p2287_p13  ;;  %p2026_p1 = por %p2025_p0, %p2024_p12 }
  0x39   : > { %p2020_p9 = pneg %p2019_p7 }
  0x3b   : > { %p2027_p2 = pnand %p2026_p1, %p2020_p9 }
  0x3d   : > { %2030 = shalt.err (!%p2027_p2)
}
  0x3e   : > { %1851 = dma.hbm_to_vmem [thread:$0]  (!%p2271_p11), %s2911_s3, 2048, %s2275_s18, [#allocation6], %s2168_s19, %s2168_s19, %s2169_s21  }
  0x3f   : > { %s2031_s24 = scalar_lea.hbm %s2913_s5, 2048 }
  0x40   : > { %p2032_p6 = scmp.ne.s32.totalorder %s2913_s5, %s2031_s24  ;;  %p2038_p5 = scmp.lt.u32.totalorder %s2031_s24, %s2913_s5 }
  0x42   : > { %p2034_p10 = pnand %p2032_p6, %p2287_p13 }
  0x44   : > { %p2035_p3 = pneg %p2034_p10 }
  0x46   : > { %p2040_p7 = pnand %p2038_p5, %p2035_p3 }
  0x48   : > { %2043 = shalt.err (!%p2040_p7)
}
  0x49   : > { %s2044_s15 = scalar_lea.vmem %s281_s20, 2048  ;;  %p2052_p1 = scmp.lt.s32.totalorder %s281_s20, %s281_s20 }
  0x4a   : > { %p2045_p9 = scmp.ne.s32.totalorder %s281_s20, %s2044_s15  ;;  %p2053_p2 = scmp.lt.s32.totalorder %s2044_s15, %s2044_s15 }
  0x4c   : > { %p2047_p12 = pnand %p2045_p9, %p2287_p13  ;;  %p2054_p4 = por %p2053_p2, %p2052_p1 }
  0x4e   : > { %p2048_p0 = pneg %p2047_p12 }
  0x50   : > { %p2055_p8 = pnand %p2054_p4, %p2048_p0 }
  0x52   : > { %2058 = shalt.err (!%p2055_p8)
}
  0x53   : > { %1854 = dma.hbm_to_vmem [thread:$0]  (!%p2271_p11), %s2913_s5, 2048, %s281_s20, [#allocation9], %s2168_s19, %s2168_s19, %s2169_s21  }
  0x54   : > { %s2360_s26 = sadd.s32 1, %s2163_s30   ;;  %s34_s12 = sadd.s32 1, %s2159_s29 }
  0x55   : > { %s31_s16 = ssub.s32 %s2163_s30, %s2360_s26  ;;  %p41_p8 = scmp.ne.s32.totalorder %s2159_s29, %s2155_s28 }
  0x56   : > { %p32_p4 = scmp.eq.s32.totalorder %s31_s16, 0  ;;  %p42_p13 = scmp.eq.s32.totalorder %s2163_s30, 0 }
  0x57   : > { %p1866_p6 = scmp.lt.s32.totalorder %s2163_s30, 2  ;;  %p2929_p3 = scmp.eq.s32.totalorder %s2241_s9, 1 }
  0x58   : > { %s2370_s22 = scalar_select %p32_p4, %s2159_s29, %s34_s12  }
  0x59   : > { %p43_p10 = por %p42_p13, %p41_p8  ;;  %p2374_p5 = por %p2929_p3, %p41_p8 }
  0x5a   : > { %s297_s24 = sand.u32 1, %s2159_s29   ;;  %s1451_s25 = sshll.u32 %s2163_s30, 11 }
  0x5b   : > { %s1416_s20 = sshll.u32 %s297_s24, 7  ;;  %s2383_s17 = scalar_lea.hbm %s2908_s0, %s1451_s25 }
  0x5c   : > { %s301_s15 = scalar_lea.vmem [#allocation2], %s1416_s20  ;;  %p2385_p11 = pnand %p1866_p6, %p43_p10 }
  0x5d   : > { %s308_s18 = sshll.u32 %s301_s15, 4  ;;  %s2391_s16 = scalar_lea.sflag [#allocation3], %s297_s24  ;;  %s2389_s18 = int_to_ptr.vmem [resolvable:$true] %s308_s18 }
  0x5e   : > { %s2059_s12 = scalar_lea.hbm %s2383_s17, 2048  ;;  %p2061_p9 = pneg %p2385_p11 }
  0x5f   : > { %p2060_p7 = scmp.ne.s32.totalorder %s2383_s17, %s2059_s12  ;;  %s2064_s10 = scalar_lea.hbm %s2908_s0, 4096 }
  0x60   : > { %p2065_p1 = scmp.lt.u32.totalorder %s2383_s17, %s2908_s0  ;;  %p2066_p2 = scmp.lt.u32.totalorder %s2064_s10, %s2059_s12 }
  0x61   : > { %p2062_p12 = pnand %p2061_p9, %p2060_p7  ;;  %p2068_p8 = scmp.lt.u32.totalorder %s2059_s12, %s2383_s17 }
  0x62   : > { %p2067_p4 = por %p2066_p2, %p2065_p1 }
  0x63   : > { %p2063_p0 = pneg %p2062_p12 }
  0x64   : > { %p2069_p13 = por %p2068_p8, %p2067_p4 }
  0x66   : > { %p2070_p6 = pnand %p2069_p13, %p2063_p0 }
  0x68   : > { %2073 = shalt.err (!%p2070_p6)
}
  0x69   : > { %s2074_s24 = scalar_lea.vmem %s2389_s18, 2048  ;;  %s2170_s25 = smov [#allocation2]  }
  0x6a   : > { %p2075_p10 = scmp.ne.s32.totalorder %s2389_s18, %s2074_s24  ;;  %s2079_s20 = sshll.u32 %s2170_s25, 4  ;;  %s2080_s20 = int_to_ptr.vmem [resolvable:$false] %s2079_s20 }
  0x6b   : > { %s2081_s14 = scalar_lea.vmem %s2080_s20, 4096  ;;  %p2082_p12 = scmp.lt.s32.totalorder %s2389_s18, %s2080_s20 }
  0x6c   : > { %p2077_p3 = pnand %p2075_p10, %p2061_p9  ;;  %p2083_p1 = scmp.lt.s32.totalorder %s2081_s14, %s2074_s24 }
  0x6e   : > { %p2078_p7 = pneg %p2077_p3  ;;  %p2084_p2 = por %p2083_p1, %p2082_p12 }
  0x70   : > { %p2085_p4 = pnand %p2084_p2, %p2078_p7 }
  0x72   : > { %2088 = shalt.err (!%p2085_p4)
}
  0x73   : > { %1858 = dma.hbm_to_vmem [thread:$0]  (!%p2385_p11), %s2383_s17, 2048, %s2389_s18, %s2391_s16, %s2168_s19, %s2168_s19, %s2169_s21  }
  0x74   : > { %p2932_p9 = scmp.ne.s32.totalorder %s2926_s13, 0 }
  0x75   : > { %s2425_s12 = sand.u32 (!%p2932_p9), 1, %s2155_s28   ;;  %p2933_p0 = scmp.ne.s32.totalorder (!%p2932_p9), %s2923_s11, 0 }
  0x76   : > { %320 = sbr.rel (%p2932_p9) target bundleno = 1181 (0x49d), region = 48  ;;  %s1420_s10 = sshll.u32 (!%p2932_p9), %s2425_s12, 7 }
  0x77   : > { %s323_s15 = scalar_lea.sflag (!%p2932_p9), [#allocation3], %s2425_s12  ;;  %s2431_s27 = scalar_lea.vmem (!%p2932_p9), [#allocation2], %s1420_s10 }
  0x7d   : > { %2134 = dma.done.wait (%p2933_p0), %s323_s15, 2048  }
  0x7e   : > { %2136 = vsyncadd (%p2933_p0), %s323_s15, 4294965248  ;;  %p2934_p11 = scmp.eq.s32.totalorder %s2241_s9, 0 }
  0x80   : > { %2138 = dma.done.wait (%p2934_p11), [#allocation6], 4096   ;;  %p2935_p8 = pmov %p2934_p11 }
  0x82   : > { %2140 = vsyncadd (%p2935_p8), [#allocation6], 4294963200  ;;  %p2936_p13 = pmov %p2935_p8 }
  0x83   : > { %p2937_p6 = pmov %p2935_p8 }
  0x84   : > { %2142 = dma.done.wait (%p2936_p13), [#allocation9], 2048  }
  0x85   : > { %2144 = vsyncadd (%p2937_p6), [#allocation9], 4294965248  ;;  %v400_v0 = vld [vmem:[#allocation5] sm:$0xff]  ;;  %v401_v1 = vld [vmem:[#allocation5 + $0x8] sm:$0xff]  ;;  %s1425_s16 = sshll.u32 %s2241_s9, 4  ;;  %s2808_s15 = scalar_lea.vmem [#allocation10], %s1420_s10 }
  0x86   : > { %v402_v2 = vld [vmem:[#allocation5 + $0x10] sm:$0xff]  ;;  %v1717_v3 = vpack.c.bf16 %v401_v1, %v400_v0  ;;  %v403_v4 = vld [vmem:[#allocation5 + $0x18] sm:$0xff]  ;;  %v404_v6 = vld [vmem:[#allocation5 + $0x20] sm:$0xff]  ;;  %p379_p10 = scmp.lt.s32.totalorder %s1425_s16, 31  ;;  %s1452_s10 = sshll.u32 %s2241_s9, 11 }
  0x87   : > { %v1721_v5 = vpack.c.bf16 %v403_v4, %v402_v2  ;;  %v405_v7 = vld [vmem:[#allocation5 + $0x28] sm:$0xff]  ;;  %v384_v9 = vld [vmem:[%s2431_s27] sm:$0xff]  ;;  %v406_v10 = vld [vmem:[#allocation5 + $0x30] sm:$0xff]  ;;  %s2851_s19 = scalar_lea.hbm %s2915_s7, %s1452_s10  ;;  %s1261_s9 = scalar_lea.sflag [#allocation4], %s2425_s12 }
  0x88   : > { %1718 = vmatprep.subr.bf16.mxu0 %v1717_v3  ;;  %v1725_v8 = vpack.c.bf16 %v405_v7, %v404_v6  ;;  %v407_v11 = vld [vmem:[#allocation5 + $0x38] sm:$0xff]  ;;  %1581 = vmatprep.mubr.f32.mxu0 %v384_v9  ;;  %v408_v13 = vld [vmem:[#allocation5 + $0x40] sm:$0xff]  ;;  %v409_v14 = vld [vmem:[#allocation5 + $0x48] sm:$0xff]  ;;  %s2953_s16 = smov (!%p379_p10, %s1425_s16), 31  ;;  %s2172_s17 = smov [#allocation10]  }
  0x89   : > { %1720 = vmatpush3.bf16.msra.mxu0 %v1717_v3  ;;  %v1729_v12 = vpack.c.bf16 %v407_v11, %v406_v10  ;;  %v584_v15 = vld [vmem:[#allocation7] sm:$0xff]  ;;  %v585_v16 = vld [vmem:[#allocation7 + $0x8] sm:$0xff]  ;;  %v586_v17 = vld [vmem:[#allocation7 + $0x10] sm:$0xff]  ;;  %v1733_v21 = vpack.c.bf16 %v409_v14, %v408_v13  ;;  %s1426_s24 = sshll.u32 %s2953_s16, 3  ;;  %s2093_s18 = sshll.u32 %s2172_s17, 4  ;;  %s2094_s18 = int_to_ptr.vmem [resolvable:$false] %s2093_s18 }
  0x8a   : > { %1722 = vmatprep.subr.bf16.mxu0 %v1721_v5  ;;  %v587_v18 = vld [vmem:[#allocation7 + $0x18] sm:$0xff]  ;;  %v1749_v19 = vpack.c.bf16 %v585_v16, %v584_v15  ;;  %v588_v22 = vld [vmem:[#allocation7 + $0x20] sm:$0xff]  ;;  %v589_v23 = vld [vmem:[#allocation7 + $0x28] sm:$0xff]  ;;  %s2750_s14 = scalar_lea.vmem %s2916_s8, %s1426_s24  ;;  %s2095_s16 = scalar_lea.vmem %s2094_s18, 4096 }
  0x8b   : > { %v1753_v20 = vpack.c.bf16 %v587_v18, %v586_v17  ;;  %v410_v24 = vld [vmem:[#allocation5 + $0x50] sm:$0xff]  ;;  %v411_v25 = vld [vmem:[#allocation5 + $0x58] sm:$0xff]  ;;  %v1757_v26 = vpack.c.bf16 %v589_v23, %v588_v22  ;;  %v412_v30 = vld [vmem:[#allocation5 + $0x60] sm:$0xff] }
  0x8c   : > { %1750 = vmatprep.subr.bf16.mxu1 %v1749_v19  ;;  %v1737_v27 = vpack.c.bf16 %v411_v25, %v410_v24  ;;  %v590_v28 = vld [vmem:[#allocation7 + $0x30] sm:$0xff]  ;;  %v591_v29 = vld [vmem:[#allocation7 + $0x38] sm:$0xff]  ;;  %v413_v31 = vld [vmem:[#allocation5 + $0x68] sm:$0xff] }
  0x8d   : > { %1724 = vmatpush3.bf16.msra.mxu0 %v1721_v5  ;;  %1752 = vmatpush3.bf16.msra.mxu1 %v1749_v19  ;;  %v1761_v32 = vpack.c.bf16 %v591_v29, %v590_v28  ;;  %v1741_v33 = vpack.c.bf16 %v413_v31, %v412_v30  ;;  %v592_v34 = vld [vmem:[#allocation7 + $0x40] sm:$0xff]  ;;  %v593_v35 = vld [vmem:[#allocation7 + $0x48] sm:$0xff]  ;;  %v414_v36 = vld [vmem:[#allocation5 + $0x70] sm:$0xff] }
  0x8e   : > { %1726 = vmatprep.subr.bf16.mxu0 %v1725_v8  ;;  %1754 = vmatprep.subr.bf16.mxu1 %v1753_v20  ;;  %v415_v37 = vld [vmem:[#allocation5 + $0x78] sm:$0xff]  ;;  %v1765_v38 = vpack.c.bf16 %v593_v35, %v592_v34  ;;  %v594_v40 = vld [vmem:[#allocation7 + $0x50] sm:$0xff]  ;;  %v596_v43 = vld [vmem:[#allocation7 + $0x60] sm:$0xff] }
  0x8f   : > { %v1745_v39 = vpack.c.bf16 %v415_v37, %v414_v36  ;;  %v595_v41 = vld [vmem:[#allocation7 + $0x58] sm:$0xff]  ;;  %v597_v44 = vld [vmem:[#allocation7 + $0x68] sm:$0xff]  ;;  %v386_v47 = vld [vmem:[%s2431_s27 + $0x10] sm:$0xff] }
  0x90   : > { %v1769_v42 = vpack.c.bf16 %v595_v41, %v594_v40  ;;  %v385_v45 = vld [vmem:[%s2431_s27 + $0x8] sm:$0xff]  ;;  %v1773_v46 = vpack.c.bf16 %v597_v44, %v596_v43  ;;  %v387_v48 = vld [vmem:[%s2431_s27 + $0x18] sm:$0xff]  ;;  %v388_v49 = vld [vmem:[%s2431_s27 + $0x20] sm:$0xff] }
  0x91   : > { %1728 = vmatpush3.bf16.msra.mxu0 %v1725_v8  ;;  %1756 = vmatpush3.bf16.msra.mxu1 %v1753_v20  ;;  %v389_v50 = vld [vmem:[%s2431_s27 + $0x28] sm:$0xff]  ;;  %v390_v51 = vld [vmem:[%s2431_s27 + $0x30] sm:$0xff]  ;;  %v391_v52 = vld [vmem:[%s2431_s27 + $0x38] sm:$0xff] }
  0x92   : > { %1730 = vmatprep.subr.bf16.mxu0 %v1729_v12  ;;  %1758 = vmatprep.subr.bf16.mxu1 %v1757_v26  ;;  %v392_v53 = vld [vmem:[%s2431_s27 + $0x40] sm:$0xff]  ;;  %v393_v54 = vld [vmem:[%s2431_s27 + $0x48] sm:$0xff]  ;;  %v394_v55 = vld [vmem:[%s2431_s27 + $0x50] sm:$0xff] }
  0x93   : > { %v395_v56 = vld [vmem:[%s2431_s27 + $0x58] sm:$0xff]  ;;  %v396_v57 = vld [vmem:[%s2431_s27 + $0x60] sm:$0xff]  ;;  %v397_v58 = vld [vmem:[%s2431_s27 + $0x68] sm:$0xff] }
  0x94   : > { %v398_v59 = vld [vmem:[%s2431_s27 + $0x70] sm:$0xff]  ;;  %v399_v60 = vld [vmem:[%s2431_s27 + $0x78] sm:$0xff]  ;;  %v768_v0 = vld [vmem:[#allocation8] sm:$0xff]  ;;  %s1279_s27 = sshll.u32 %s2808_s15, 4  ;;  %s2853_s27 = int_to_ptr.vmem [resolvable:$true] %s1279_s27 }
  0x95   : > { %1732 = vmatpush3.bf16.msra.mxu0 %v1729_v12  ;;  %1760 = vmatpush3.bf16.msra.mxu1 %v1757_v26  ;;  %v598_v61 = vld [vmem:[#allocation7 + $0x70] sm:$0xff]  ;;  %v599_v62 = vld [vmem:[#allocation7 + $0x78] sm:$0xff]  ;;  %v769_v1 = vld [vmem:[#allocation8 + $0x8] sm:$0xff]  ;;  %s2089_s21 = scalar_lea.vmem %s2853_s27, 2048  ;;  %p2096_p1 = scmp.lt.s32.totalorder %s2853_s27, %s2094_s18 }
  0x96   : > { %1734 = vmatprep.subr.bf16.mxu0 %v1733_v21  ;;  %1762 = vmatprep.subr.bf16.mxu1 %v1761_v32  ;;  %v1777_v63 = vpack.c.bf16 %v599_v62, %v598_v61  ;;  %v770_v2 = vld [vmem:[#allocation8 + $0x10] sm:$0xff]  ;;  %v1781_v3 = vpack.c.bf16 %v769_v1, %v768_v0  ;;  %v771_v4 = vld [vmem:[#allocation8 + $0x18] sm:$0xff]  ;;  %v772_v6 = vld [vmem:[#allocation8 + $0x20] sm:$0xff]  ;;  %p2090_p3 = scmp.ne.s32.totalorder %s2853_s27, %s2089_s21  ;;  %p2097_p2 = scmp.lt.s32.totalorder %s2095_s16, %s2089_s21 }
  0x97   : > { %v1785_v5 = vpack.c.bf16 %v771_v4, %v770_v2  ;;  %v773_v7 = vld [vmem:[#allocation8 + $0x28] sm:$0xff]  ;;  %v774_v9 = vld [vmem:[#allocation8 + $0x30] sm:$0xff]  ;;  %v775_v10 = vld [vmem:[#allocation8 + $0x38] sm:$0xff] }
  0x98   : > { %v1789_v8 = vpack.c.bf16 %v773_v7, %v772_v6  ;;  %v2461_v11 = vpack.c.bf16 %v775_v10, %v774_v9  ;;  %v776_v12 = vld [vmem:[#allocation8 + $0x40] sm:$0xff]  ;;  %v777_v13 = vld [vmem:[#allocation8 + $0x48] sm:$0xff]  ;;  %v778_v15 = vld [vmem:[#allocation8 + $0x50] sm:$0xff]  ;;  %p2091_p7 = pnand %p2090_p3, %p2374_p5  ;;  %p2098_p4 = por %p2097_p2, %p2096_p1 }
  0x99   : > { %1736 = vmatpush3.bf16.msra.mxu0 %v1733_v21  ;;  %1764 = vmatpush3.bf16.msra.mxu1 %v1761_v32  ;;  %v2464_v14 = vpack.c.bf16 %v777_v13, %v776_v12  ;;  %v779_v16 = vld [vmem:[#allocation8 + $0x58] sm:$0xff]  ;;  %v780_v18 = vld [vmem:[#allocation8 + $0x60] sm:$0xff]  ;;  %v781_v19 = vld [vmem:[#allocation8 + $0x68] sm:$0xff] }
  0x9a   : > { %1738 = vmatprep.subr.bf16.mxu0 %v1737_v27  ;;  %1766 = vmatprep.subr.bf16.mxu1 %v1765_v38  ;;  %v2468_v17 = vpack.c.bf16 %v779_v16, %v778_v15  ;;  %v2472_v20 = vpack.c.bf16 %v781_v19, %v780_v18  ;;  %v2480_v21 = vld [vmem:[%s2910_s2] ss:$0 sm:$0xff]  ;;  %v782_v6 = vld [vmem:[#allocation8 + $0x70] sm:$0xff]  ;;  %v783_v7 = vld [vmem:[#allocation8 + $0x78] sm:$0xff]  ;;  %p2092_p12 = pneg %p2091_p7 }
  0x9b   : > { %v1428_v9 = vld [vmem:[%s2912_s4] ss:$0 sm:$0xff] }
  0x9c   : > { %p2099_p9 = pnand %p2098_p4, %p2092_p12 }
  0x9d   : > { %1740 = vmatpush3.bf16.msra.mxu0 %v1737_v27  ;;  %1768 = vmatpush3.bf16.msra.mxu1 %v1765_v38 }
  0x9e   : > { %1742 = vmatprep.subr.bf16.mxu0 %v1741_v33  ;;  %1770 = vmatprep.subr.bf16.mxu1 %v1769_v42 }
  0xa1   : > { %1744 = vmatpush3.bf16.msra.mxu0 %v1741_v33  ;;  %1772 = vmatpush3.bf16.msra.mxu1 %v1769_v42 }
  0xa2   : > { %1746 = vmatprep.subr.bf16.mxu0 %v1745_v39  ;;  %1774 = vmatprep.subr.bf16.mxu1 %v1773_v46 }
  0xa5   : > { %1748 = vmatpush3.bf16.msra.mxu0 %v1745_v39  ;;  %1776 = vmatpush3.bf16.msra.mxu1 %v1773_v46 }
  0xa6   : > { %1778 = vmatprep.subr.bf16.mxu1 %v1777_v63  ;;  %1782 = vmatprep.subr.bf16.mxu0 %v1781_v3 }
  0xa8   : > { %1582 = vmatmul.mubr.f32.vlgmr.msra.gmra.mrb[0].mxu0 %v385_v45 }
  0xa9   : > { %1584 = vmatprep.mubr.f32.mxu0 %v386_v47  ;;  %1780 = vmatpush3.bf16.msra.mxu1 %v1777_v63 }
  0xaa   : > { %1813 = vmatprep.subr.bf16.mxu1 %v1781_v3  ;;  %1784 = vmatpush3.bf16.msra.mxu0 %v1781_v3 }
  0xab   : > { %1786 = vmatprep.subr.bf16.mxu0 %v1785_v5 }
  0xac   : > { %1585 = vmatmul.mubr.f32.gmra.mrb[2].mxu0 %v387_v48 }
  0xad   : > { %1587 = vmatprep.mubr.f32.mxu0 %v388_v49 }
  0xae   : > { %1788 = vmatpush3.bf16.msra.mxu0 %v1785_v5 }
  0xaf   : > { %1790 = vmatprep.subr.bf16.mxu0 %v1789_v8 }
  0xb0   : > { %1588 = vmatmul.mubr.f32.gmra.mrb[4].mxu0 %v389_v50 }
  0xb1   : > { %1590 = vmatprep.mubr.f32.mxu0 %v390_v51 }
  0xb2   : > { %1792 = vmatpush3.bf16.msra.mxu0 %v1789_v8 }
  0xb3   : > { %1794 = vmatprep.subr.bf16.mxu0 %v2461_v11 }
  0xb4   : > { %1591 = vmatmul.mubr.f32.gmra.mrb[6].mxu0 %v391_v52 }
  0xb5   : > { %1593 = vmatprep.mubr.f32.mxu0 %v392_v53 }
  0xb6   : > { %1796 = vmatpush3.bf16.msra.mxu0 %v2461_v11 }
  0xb7   : > { %1798 = vmatprep.subr.bf16.mxu0 %v2464_v14 }
  0xb8   : > { %1594 = vmatmul.mubr.f32.gmra.mrb[8].mxu0 %v393_v54 }
  0xb9   : > { %1596 = vmatprep.mubr.f32.mxu0 %v394_v55 }
  0xba   : > { %1800 = vmatpush3.bf16.msra.mxu0 %v2464_v14 }
  0xbb   : > { %1802 = vmatprep.subr.bf16.mxu0 %v2468_v17 }
  0xbc   : > { %1597 = vmatmul.mubr.f32.gmra.mrb[10].mxu0 %v395_v56 }
  0xbd   : > { %1599 = vmatprep.mubr.f32.mxu0 %v396_v57 }
  0xbe   : > { %1804 = vmatpush3.bf16.msra.mxu0 %v2468_v17 }
  0xbf   : > { %1806 = vmatprep.subr.bf16.mxu0 %v2472_v20 }
  0xc0   : > { %1600 = vmatmul.mubr.f32.gmra.mrb[12].mxu0 %v397_v58 }
  0xc1   : > { %1602 = vmatprep.mubr.f32.mxu0 %v398_v59 }
  0xc2   : > { %1808 = vmatpush3.bf16.msra.mxu0 %v2472_v20 }
  0xc4   : > { %1603 = vmatmul.mubr.f32.gmra.mrb[14].mxu0 %v399_v60 }
 0x17b   : > { %v1583_v22 = vpop.f32.mrb[0].mxu0 }
 0x17c   : > { %v495_v23 = vadd.f32 %v1583_v22, %v2480_v21  ;;  %v489_v24 = vpop.f32.mrb[1].mxu0 }
 0x17d   : > { %v490_v25 = vadd.f32 %v2480_v21, %v489_v24 }
 0x17e   : > { %v569_v28 = vmax.f32 %v495_v23, 0.0 }
 0x17f   : > { %v1586_v26 = vpop.f32.mrb[2].mxu0  ;;  %v568_v27 = vmax.f32 %v490_v25, 0.0 }
 0x180   : > { %v505_v29 = vadd.f32 %v1586_v26, %v2480_v21  ;;  %v499_v30 = vpop.f32.mrb[3].mxu0 }
 0x181   : > { %v500_v31 = vadd.f32 %v2480_v21, %v499_v30  ;;  %1637 = vmatprep.mubr.f32.mxu1 %v568_v27 }
 0x182   : > { %1638 = vmatmul.mubr.f32.vlgmr.msra.gmra.mrb[0].mxu1 %v569_v28  ;;  %v571_v34 = vmax.f32 %v505_v29, 0.0 }
 0x183   : > { %v570_v32 = vmax.f32 %v500_v31, 0.0  ;;  %v1589_v33 = vpop.f32.mrb[4].mxu0  ;;  %1821 = vmatpush3.bf16.msra.mxu1 %v1781_v3 }
 0x184   : > { %v515_v35 = vadd.f32 %v1589_v33, %v2480_v21  ;;  %v509_v36 = vpop.f32.mrb[5].mxu0  ;;  %1814 = vmatprep.subr.bf16.mxu1 %v1785_v5 }
 0x185   : > { %v510_v37 = vadd.f32 %v2480_v21, %v509_v36  ;;  %1640 = vmatprep.mubr.f32.mxu1 %v570_v32 }
 0x186   : > { %v573_v38 = vmax.f32 %v515_v35, 0.0  ;;  %1641 = vmatmul.mubr.f32.gmra.mrb[2].mxu1 %v571_v34 }
 0x187   : > { %v572_v39 = vmax.f32 %v510_v37, 0.0  ;;  %v1592_v40 = vpop.f32.mrb[6].mxu0  ;;  %1822 = vmatpush3.bf16.msra.mxu1 %v1785_v5 }
 0x188   : > { %v525_v41 = vadd.f32 %v1592_v40, %v2480_v21  ;;  %v519_v42 = vpop.f32.mrb[7].mxu0  ;;  %1815 = vmatprep.subr.bf16.mxu1 %v1789_v8 }
 0x189   : > { %v520_v43 = vadd.f32 %v2480_v21, %v519_v42  ;;  %1643 = vmatprep.mubr.f32.mxu1 %v572_v39 }
 0x18a   : > { %v575_v44 = vmax.f32 %v525_v41, 0.0  ;;  %1644 = vmatmul.mubr.f32.gmra.mrb[4].mxu1 %v573_v38 }
 0x18b   : > { %v574_v45 = vmax.f32 %v520_v43, 0.0  ;;  %v1595_v46 = vpop.f32.mrb[8].mxu0  ;;  %1823 = vmatpush3.bf16.msra.mxu1 %v1789_v8  ;;  %v1809_v8 = vpack.c.bf16 %v783_v7, %v782_v6 }
 0x18c   : > { %v535_v47 = vadd.f32 %v1595_v46, %v2480_v21  ;;  %v529_v48 = vpop.f32.mrb[9].mxu0  ;;  %1816 = vmatprep.subr.bf16.mxu1 %v2461_v11 }
 0x18d   : > { %v530_v49 = vadd.f32 %v2480_v21, %v529_v48  ;;  %1646 = vmatprep.mubr.f32.mxu1 %v574_v45  ;;  %1810 = vmatprep.subr.bf16.mxu0 %v1809_v8 }
 0x18e   : > { %v577_v50 = vmax.f32 %v535_v47, 0.0  ;;  %1647 = vmatmul.mubr.f32.gmra.mrb[6].mxu1 %v575_v44  ;;  %1812 = vmatpush3.bf16.msra.mxu0 %v1809_v8 }
 0x18f   : > { %v576_v51 = vmax.f32 %v530_v49, 0.0  ;;  %v1598_v52 = vpop.f32.mrb[10].mxu0  ;;  %1824 = vmatpush3.bf16.msra.mxu1 %v2461_v11 }
 0x190   : > { %v545_v53 = vadd.f32 %v1598_v52, %v2480_v21  ;;  %v539_v54 = vpop.f32.mrb[11].mxu0  ;;  %1817 = vmatprep.subr.bf16.mxu1 %v2464_v14 }
 0x191   : > { %v540_v55 = vadd.f32 %v2480_v21, %v539_v54  ;;  %1649 = vmatprep.mubr.f32.mxu1 %v576_v51 }
 0x192   : > { %v579_v56 = vmax.f32 %v545_v53, 0.0  ;;  %1650 = vmatmul.mubr.f32.gmra.mrb[8].mxu1 %v577_v50 }
 0x193   : > { %v578_v57 = vmax.f32 %v540_v55, 0.0  ;;  %v1601_v58 = vpop.f32.mrb[12].mxu0  ;;  %1825 = vmatpush3.bf16.msra.mxu1 %v2464_v14 }
 0x194   : > { %v555_v59 = vadd.f32 %v1601_v58, %v2480_v21  ;;  %v549_v60 = vpop.f32.mrb[13].mxu0  ;;  %1818 = vmatprep.subr.bf16.mxu1 %v2468_v17  ;;  %v1081_v58 = vlaneseq }
 0x195   : > { %v550_v61 = vadd.f32 %v2480_v21, %v549_v60  ;;  %1652 = vmatprep.mubr.f32.mxu1 %v578_v57  ;;  %v2514_v60 = vld [vmem:[%s2914_s6] ss:$0 sm:$0xff] }
 0x196   : > { %v581_v62 = vmax.f32 %v555_v59, 0.0  ;;  %1653 = vmatmul.mubr.f32.gmra.mrb[10].mxu1 %v579_v56  ;;  %v2509_v59 = vand.u32 127, %v1081_v58 }
 0x197   : > { %v580_v63 = vmax.f32 %v550_v61, 0.0  ;;  %v1604_v0 = vpop.f32.mrb[14].mxu0  ;;  %1826 = vmatpush3.bf16.msra.mxu1 %v2468_v17 }
 0x198   : > { %v565_v1 = vadd.f32 %v1604_v0, %v2480_v21  ;;  %v559_v2 = vpop.f32.mrb[15].mxu0  ;;  %1819 = vmatprep.subr.bf16.mxu1 %v2472_v20  ;;  %vm1083_vm0 = vcmp.lt.s32.totalorder %v2509_v59, 15 }
 0x199   : > { %v560_v3 = vadd.f32 %v2480_v21, %v559_v2  ;;  %1655 = vmatprep.mubr.f32.mxu1 %v580_v63 }
 0x19a   : > { %v583_v4 = vmax.f32 %v565_v1, 0.0  ;;  %1656 = vmatmul.mubr.f32.gmra.mrb[12].mxu1 %v581_v62 }
 0x19b   : > { %v582_v5 = vmax.f32 %v560_v3, 0.0  ;;  %1827 = vmatpush3.bf16.msra.mxu1 %v2472_v20 }
 0x19c   : > { %1820 = vmatprep.subr.bf16.mxu1 %v1809_v8 }
 0x19d   : > { %1658 = vmatprep.mubr.f32.mxu1 %v582_v5 }
 0x19e   : > { %1659 = vmatmul.mubr.f32.gmra.mrb[14].mxu1 %v583_v4 }
 0x19f   : > { %1828 = vmatpush3.bf16.msra.mxu1 %v1809_v8 }
 0x255   : > { %v1639_v10 = vpop.f32.mrb[0].mxu1 }
 0x256   : > { %v679_v11 = vadd.f32 %v1639_v10, %v1428_v9  ;;  %v673_v12 = vpop.f32.mrb[1].mxu1 }
 0x257   : > { %v674_v13 = vadd.f32 %v1428_v9, %v673_v12 }
 0x258   : > { %v753_v16 = vmax.f32 %v679_v11, 0.0 }
 0x259   : > { %v752_v14 = vmax.f32 %v674_v13, 0.0  ;;  %v1642_v15 = vpop.f32.mrb[2].mxu1 }
 0x25a   : > { %v689_v17 = vadd.f32 %v1642_v15, %v1428_v9  ;;  %v683_v18 = vpop.f32.mrb[3].mxu1 }
 0x25b   : > { %v684_v19 = vadd.f32 %v1428_v9, %v683_v18  ;;  %1693 = vmatprep.mubr.f32.mxu0 %v752_v14 }
 0x25c   : > { %1694 = vmatmul.mubr.f32.vlgmr.msra.gmra.mrb[16].mxu0 %v753_v16  ;;  %v755_v22 = vmax.f32 %v689_v17, 0.0 }
 0x25d   : > { %v754_v20 = vmax.f32 %v684_v19, 0.0  ;;  %v1645_v21 = vpop.f32.mrb[4].mxu1 }
 0x25e   : > { %v699_v23 = vadd.f32 %v1645_v21, %v1428_v9  ;;  %v693_v24 = vpop.f32.mrb[5].mxu1 }
 0x25f   : > { %v694_v25 = vadd.f32 %v1428_v9, %v693_v24  ;;  %1696 = vmatprep.mubr.f32.mxu0 %v754_v20 }
 0x260   : > { %v757_v26 = vmax.f32 %v699_v23, 0.0  ;;  %1697 = vmatmul.mubr.f32.gmra.mrb[18].mxu0 %v755_v22 }
 0x261   : > { %v756_v27 = vmax.f32 %v694_v25, 0.0  ;;  %v1648_v28 = vpop.f32.mrb[6].mxu1 }
 0x262   : > { %v709_v29 = vadd.f32 %v1648_v28, %v1428_v9  ;;  %v703_v30 = vpop.f32.mrb[7].mxu1 }
 0x263   : > { %v704_v31 = vadd.f32 %v1428_v9, %v703_v30  ;;  %1699 = vmatprep.mubr.f32.mxu0 %v756_v27 }
 0x264   : > { %v759_v32 = vmax.f32 %v709_v29, 0.0  ;;  %1700 = vmatmul.mubr.f32.gmra.mrb[20].mxu0 %v757_v26 }
 0x265   : > { %v758_v33 = vmax.f32 %v704_v31, 0.0  ;;  %v1651_v34 = vpop.f32.mrb[8].mxu1 }
 0x266   : > { %v719_v35 = vadd.f32 %v1651_v34, %v1428_v9  ;;  %v713_v36 = vpop.f32.mrb[9].mxu1 }
 0x267   : > { %v714_v37 = vadd.f32 %v1428_v9, %v713_v36  ;;  %1702 = vmatprep.mubr.f32.mxu0 %v758_v33  ;;  %v2171_v33 = vmov 0.0  }
 0x268   : > { %v761_v38 = vmax.f32 %v719_v35, 0.0  ;;  %1703 = vmatmul.mubr.f32.gmra.mrb[22].mxu0 %v759_v32 }
 0x269   : > { %v760_v39 = vmax.f32 %v714_v37, 0.0  ;;  %v1654_v40 = vpop.f32.mrb[10].mxu1 }
 0x26a   : > { %v729_v41 = vadd.f32 %v1654_v40, %v1428_v9  ;;  %v723_v42 = vpop.f32.mrb[11].mxu1 }
 0x26b   : > { %v724_v43 = vadd.f32 %v1428_v9, %v723_v42  ;;  %1705 = vmatprep.mubr.f32.mxu1 %v760_v39 }
 0x26c   : > { %v763_v44 = vmax.f32 %v729_v41, 0.0  ;;  %1706 = vmatmul.mubr.f32.vlgmr.msra.gmra.mrb[16].mxu1 %v761_v38 }
 0x26d   : > { %v762_v45 = vmax.f32 %v724_v43, 0.0  ;;  %v1657_v46 = vpop.f32.mrb[12].mxu1 }
 0x26e   : > { %v739_v47 = vadd.f32 %v1657_v46, %v1428_v9  ;;  %v733_v48 = vpop.f32.mrb[13].mxu1 }
 0x26f   : > { %v734_v49 = vadd.f32 %v1428_v9, %v733_v48  ;;  %1708 = vmatprep.mubr.f32.mxu1 %v762_v45 }
 0x270   : > { %v765_v50 = vmax.f32 %v739_v47, 0.0  ;;  %1709 = vmatmul.mubr.f32.gmra.mrb[18].mxu1 %v763_v44 }
 0x271   : > { %v764_v51 = vmax.f32 %v734_v49, 0.0  ;;  %v1660_v52 = vpop.f32.mrb[14].mxu1 }
 0x272   : > { %v749_v53 = vadd.f32 %v1660_v52, %v1428_v9  ;;  %v743_v54 = vpop.f32.mrb[15].mxu1 }
 0x273   : > { %v744_v55 = vadd.f32 %v1428_v9, %v743_v54  ;;  %1711 = vmatprep.mubr.f32.mxu1 %v764_v51 }
 0x274   : > { %v767_v56 = vmax.f32 %v749_v53, 0.0  ;;  %1712 = vmatmul.mubr.f32.gmra.mrb[20].mxu1 %v765_v50 }
 0x275   : > { %v766_v57 = vmax.f32 %v744_v55, 0.0 }
 0x277   : > { %1714 = vmatprep.mubr.f32.mxu1 %v766_v57 }
 0x278   : > { %1715 = vmatmul.mubr.f32.gmra.mrb[22].mxu1 %v767_v56 }
 0x32f   : > { %v1695_v61 = vpop.f32.mrb[16].mxu0 }
 0x330   : > { %v2518_v62 = vadd.f32 %v1695_v61, %v2514_v60  ;;  %v857_v63 = vpop.f32.mrb[17].mxu0 }
 0x331   : > { %v2521_v0 = vadd.f32 %v2514_v60, %v857_v63 }
 0x332   : > { %v2526_v1 = vsel %vm1083_vm0, %v2518_v62, -inf  ;;  %v953_v45 = vand.u32 2147483647, %v2518_v62 }
 0x333   : > { %1102 = vmax.xlane.f32.xlu0 %v2526_v1  ;;  %v1698_v2 = vpop.f32.mrb[18].mxu0  ;;  %v2543_v7 = vsel %vm1083_vm0, %v2521_v0, -inf  ;;  %v952_v42 = vand.u32 2147483647, %v2521_v0 }
 0x334   : > { %v2530_v3 = vadd.f32 %v1698_v2, %v2514_v60  ;;  %v867_v4 = vpop.f32.mrb[19].mxu0 }
 0x335   : > { %v2533_v5 = vadd.f32 %v2514_v60, %v867_v4  ;;  %vm2635_vm13 = vcmp.eq.f32.partialorder %v952_v42, inf }
 0x336   : > { %v2538_v6 = vsel %vm1083_vm0, %v2530_v3, -inf }
 0x337   : > { %1106 = vmax.xlane.f32.xlu1 %v2538_v6  ;;  %v1701_v8 = vpop.f32.mrb[20].mxu0  ;;  %1100 = vmax.xlane.f32.xlu0 %v2543_v7  ;;  %v2556_v12 = vsel %vm1083_vm0, %v2533_v5, -inf  ;;  %v954_v56 = vand.u32 2147483647, %v2533_v5 }
 0x338   : > { %v877_v9 = vpop.f32.mrb[21].mxu0  ;;  %v2551_v11 = vadd.f32 %v1701_v8, %v2514_v60  ;;  %v955_v8 = vand.u32 2147483647, %v2530_v3 }
 0x339   : > { %v2548_v10 = vadd.f32 %v2514_v60, %v877_v9 }
 0x33a   : > { %v2574_v18 = vsel %vm1083_vm0, %v2551_v11, -inf }
 0x33b   : > { %v1704_v13 = vpop.f32.mrb[22].mxu0  ;;  %1104 = vmax.xlane.f32.xlu1 %v2556_v12  ;;  %v2562_v14 = vsel %vm1083_vm0, %v2548_v10, -inf }
 0x33c   : > { %v887_v15 = vpop.f32.mrb[23].mxu0  ;;  %1108 = vmax.xlane.f32.xlu0 %v2562_v14  ;;  %v2569_v17 = vadd.f32 %v1704_v13, %v2514_v60 }
 0x33d   : > { %v2566_v16 = vadd.f32 %v2514_v60, %v887_v15 }
 0x33e   : > { %v2588_v24 = vsel %vm1083_vm0, %v2569_v17, -inf }
 0x33f   : > { %v1707_v19 = vpop.f32.mrb[16].mxu1  ;;  %1110 = vmax.xlane.f32.xlu1 %v2574_v18  ;;  %v2580_v20 = vsel %vm1083_vm0, %v2566_v16, -inf }
 0x340   : > { %v903_v21 = vadd.f32 %v1707_v19, %v2514_v60  ;;  %v897_v22 = vpop.f32.mrb[17].mxu1  ;;  %1112 = vmax.xlane.f32.xlu0 %v2580_v20 }
 0x341   : > { %v898_v23 = vadd.f32 %v2514_v60, %v897_v22 }
 0x342   : > { %v961_v25 = vand.u32 2147483647, %v903_v21  ;;  %vm945_vm1 = vcmp.ne.f32.partialorder %v903_v21, %v903_v21  ;;  %v2600_v32 = vsel %vm1083_vm0, %v903_v21, -inf  ;;  %v958_v21 = vand.u32 2147483647, %v2566_v16 }
 0x343   : > { %v1710_v26 = vpop.f32.mrb[18].mxu1  ;;  %1114 = vmax.xlane.f32.xlu1 %v2588_v24  ;;  %v2593_v27 = vsel %vm1083_vm0, %v898_v23, -inf  ;;  %v960_v28 = vand.u32 2147483647, %v898_v23  ;;  %vm944_vm4 = vcmp.ne.f32.partialorder %v898_v23, %v898_v23  ;;  %v959_v23 = vand.u32 2147483647, %v2569_v17 }
 0x344   : > { %v913_v29 = vadd.f32 %v1710_v26, %v2514_v60  ;;  %v907_v30 = vpop.f32.mrb[19].mxu1  ;;  %1116 = vmax.xlane.f32.xlu0 %v2593_v27  ;;  %vm977_vm2 = vcmp.eq.f32.partialorder %v961_v25, inf }
 0x345   : > { %v908_v31 = vadd.f32 %v2514_v60, %v907_v30  ;;  %vm993_vm3 = vmor %vm945_vm1, %vm977_vm2  ;;  %vm976_vm5 = vcmp.eq.f32.partialorder %v960_v28, inf }
 0x346   : > { %v2603_v34 = vsel %vm993_vm3, 1.0, %v2171_v33  ;;  %vm992_vm6 = vmor %vm944_vm4, %vm976_vm5  ;;  %v963_v35 = vand.u32 2147483647, %v913_v29  ;;  %vm947_vm7 = vcmp.ne.f32.partialorder %v913_v29, %v913_v29  ;;  %v2619_v44 = vsel %vm1083_vm0, %v913_v29, -inf }
 0x347   : > { %v1713_v36 = vpop.f32.mrb[20].mxu1  ;;  %1118 = vmax.xlane.f32.xlu1 %v2600_v32  ;;  %v2608_v37 = vsel %vm1083_vm0, %v908_v31, -inf  ;;  %v2611_v38 = vsel %vm992_vm6, 1.0, %v2171_v33  ;;  %v962_v39 = vand.u32 2147483647, %v908_v31  ;;  %vm946_vm10 = vcmp.ne.f32.partialorder %v908_v31, %v908_v31 }
 0x348   : > { %v923_v40 = vadd.f32 %v1713_v36, %v2514_v60  ;;  %v917_v41 = vpop.f32.mrb[21].mxu1  ;;  %1120 = vmax.xlane.f32.xlu0 %v2608_v37  ;;  %vm979_vm8 = vcmp.eq.f32.partialorder %v963_v35, inf  ;;  %vm936_vm5 = vcmp.ne.f32.partialorder %v2521_v0, %v2521_v0  ;;  %v956_v0 = vand.u32 2147483647, %v2548_v10 }
 0x349   : > { %v918_v43 = vadd.f32 %v2514_v60, %v917_v41  ;;  %vm995_vm9 = vmor %vm947_vm7, %vm979_vm8  ;;  %vm978_vm11 = vcmp.eq.f32.partialorder %v962_v39, inf  ;;  %vm2661_vm7 = vcmp.eq.f32.partialorder %v953_v45, inf }
 0x34a   : > { %v2623_v46 = vsel %vm995_vm9, 1.0, %v2171_v33  ;;  %vm994_vm12 = vmor %vm946_vm10, %vm978_vm11  ;;  %v965_v47 = vand.u32 2147483647, %v923_v40  ;;  %vm949_vm14 = vcmp.ne.f32.partialorder %v923_v40, %v923_v40  ;;  %v2643_v57 = vsel %vm1083_vm0, %v923_v40, -inf }
 0x34b   : > { %v1716_v48 = vpop.f32.mrb[22].mxu1  ;;  %1122 = vmax.xlane.f32.xlu1 %v2619_v44  ;;  %v2628_v49 = vsel %vm1083_vm0, %v918_v43, -inf  ;;  %v2631_v50 = vsel %vm994_vm12, 1.0, %v2171_v33  ;;  %v964_v51 = vand.u32 2147483647, %v918_v43  ;;  %vm948_vm2 = vcmp.ne.f32.partialorder %v918_v43, %v918_v43  ;;  %vm984_vm6 = vmor %vm936_vm5, %vm2635_vm13 }
 0x34c   : > { %v933_v52 = vadd.f32 %v1716_v48, %v2514_v60  ;;  %v927_v53 = vpop.f32.mrb[23].mxu1  ;;  %1124 = vmax.xlane.f32.xlu0 %v2628_v49  ;;  %vm981_vm15 = vcmp.eq.f32.partialorder %v965_v47, inf  ;;  %vm2666_vm10 = vcmp.eq.f32.partialorder %v954_v56, inf  ;;  %vm937_vm13 = vcmp.ne.f32.partialorder %v2518_v62, %v2518_v62 }
 0x34d   : > { %v928_v55 = vadd.f32 %v2514_v60, %v927_v53  ;;  %vm997_vm1 = vmor %vm949_vm14, %vm981_vm15  ;;  %vm980_vm3 = vcmp.eq.f32.partialorder %v964_v51, inf  ;;  %v1430_v19 = vsel %vm984_vm6, 1.0, %v2171_v33  ;;  %v957_v62 = vand.u32 2147483647, %v2551_v11 }
 0x34e   : > { %v2646_v58 = vsel %vm997_vm1, 1.0, %v2171_v33  ;;  %vm996_vm4 = vmor %vm948_vm2, %vm980_vm3  ;;  %v967_v61 = vand.u32 2147483647, %v933_v52  ;;  %vm951_vm8 = vcmp.ne.f32.partialorder %v933_v52, %v933_v52  ;;  %v2673_v13 = vsel %vm1083_vm0, %v933_v52, -inf }
 0x34f   : > { %1126 = vmax.xlane.f32.xlu1 %v2643_v57  ;;  %v2651_v63 = vsel %vm1083_vm0, %v928_v55, -inf  ;;  %v2656_v60 = vsel %vm996_vm4, 1.0, %v2171_v33  ;;  %v966_v2 = vand.u32 2147483647, %v928_v55  ;;  %vm950_vm12 = vcmp.ne.f32.partialorder %v928_v55, %v928_v55  ;;  %vm985_vm1 = vmor %vm937_vm13, %vm2661_vm7 }
 0x350   : > { %1128 = vmax.xlane.f32.xlu0 %v2651_v63  ;;  %vm983_vm9 = vcmp.eq.f32.partialorder %v967_v61, inf  ;;  %vm938_vm2 = vcmp.ne.f32.partialorder %v2533_v5, %v2533_v5  ;;  %vm971_vm3 = vcmp.eq.f32.partialorder %v955_v8, inf  ;;  %vm972_vm4 = vcmp.eq.f32.partialorder %v956_v0, inf }
 0x351   : > { %vm999_vm11 = vmor %vm951_vm8, %vm983_vm9  ;;  %vm982_vm14 = vcmp.eq.f32.partialorder %v966_v2, inf  ;;  %v1431_v22 = vsel %vm985_vm1, 1.0, %v2171_v33  ;;  %vm939_vm5 = vcmp.ne.f32.partialorder %v2530_v3, %v2530_v3  ;;  %vm940_vm7 = vcmp.ne.f32.partialorder %v2548_v10, %v2548_v10 }
 0x352   : > { %v2678_v15 = vsel %vm999_vm11, 1.0, %v2171_v33  ;;  %vm998_vm15 = vmor %vm950_vm12, %vm982_vm14  ;;  %vm973_vm9 = vcmp.eq.f32.partialorder %v957_v62, inf  ;;  %vm941_vm11 = vcmp.ne.f32.partialorder %v2551_v11, %v2551_v11  ;;  %vm942_vm14 = vcmp.ne.f32.partialorder %v2566_v16, %v2566_v16 }
 0x353   : > { %1130 = vmax.xlane.f32.xlu1 %v2673_v13  ;;  %v2687_v59 = vsel %vm998_vm15, 1.0, %v2171_v33  ;;  %vm986_vm0 = vmor %vm938_vm2, %vm2666_vm10  ;;  %vm974_vm10 = vcmp.eq.f32.partialorder %v958_v21, inf  ;;  %vm975_vm15 = vcmp.eq.f32.partialorder %v959_v23, inf  ;;  %vm943_vm1 = vcmp.ne.f32.partialorder %v2569_v17, %v2569_v17 }
 0x354   : > { %1032 = vmax.xlane.f32.xlu0 %v1430_v19  ;;  %v1432_v5 = vsel %vm986_vm0, 1.0, %v2171_v33  ;;  %vm987_vm6 = vmor %vm939_vm5, %vm971_vm3  ;;  %vm1064_vm0 = vcmask 7168  }
 0x355   : > { %vm988_vm8 = vmor %vm940_vm7, %vm972_vm4  ;;  %v1433_v25 = vsel %vm987_vm6, 1.0, %v2171_v33 }
 0x356   : > { %v1434_v3 = vsel %vm988_vm8, 1.0, %v2171_v33  ;;  %vm989_vm12 = vmor %vm941_vm11, %vm973_vm9 }
 0x357   : > { %1034 = vmax.xlane.f32.xlu1 %v1431_v22  ;;  %vm990_vm13 = vmor %vm942_vm14, %vm974_vm10  ;;  %v1435_v10 = vsel %vm989_vm12, 1.0, %v2171_v33 }
 0x358   : > { %1036 = vmax.xlane.f32.xlu0 %v1432_v5  ;;  %v1436_v26 = vsel %vm990_vm13, 1.0, %v2171_v33  ;;  %vm991_vm2 = vmor %vm943_vm1, %vm975_vm15 }
 0x359   : > { %v1437_v11 = vsel %vm991_vm2, 1.0, %v2171_v33 }
 0x35b   : > { %1038 = vmax.xlane.f32.xlu1 %v1433_v25 }
 0x35c   : > { %1040 = vmax.xlane.f32.xlu0 %v1434_v3 }
 0x35f   : > { %1042 = vmax.xlane.f32.xlu1 %v1435_v10 }
 0x360   : > { %1044 = vmax.xlane.f32.xlu0 %v1436_v26 }
 0x363   : > { %1046 = vmax.xlane.f32.xlu1 %v1437_v11 }
 0x3c0   : > { %v1103_v28 = vpop.xlane.xlu0 %1102 }
 0x3c1   : > { %v1133_v29 = vsub.f32 %v2526_v1, %v1103_v28 }
 0x3c3   : > { %v1150_v16 = vmul.f32 1.442695, %v1133_v29 }
 0x3c4   : > { %v1107_v30 = vpop.xlane.xlu1 %1106  ;;  %v1101_v31 = vpop.xlane.xlu0 %1100 }
 0x3c5   : > { %1911 = vpow2.f32 %v1150_v16  ;;  %v1135_v35 = vsub.f32 %v2538_v6, %v1107_v30  ;;  %v1132_v36 = vsub.f32 %v2543_v7, %v1101_v31 }
 0x3c7   : > { %v1154_v17 = vmul.f32 1.442695, %v1135_v35  ;;  %v1148_v39 = vmul.f32 1.442695, %v1132_v36 }
 0x3c8   : > { %v1105_v40 = vpop.xlane.xlu1 %1104 }
 0x3c9   : > { %1913 = vpow2.f32 %v1154_v17  ;;  %v1134_v41 = vsub.f32 %v2556_v12, %v1105_v40  ;;  %v1109_v42 = vpop.xlane.xlu0 %1108 }
 0x3ca   : > { %1915 = vpow2.f32 %v1148_v39  ;;  %v1136_v33 = vsub.f32 %v2562_v14, %v1109_v42 }
 0x3cb   : > { %v1152_v1 = vmul.f32 1.442695, %v1134_v41 }
 0x3cc   : > { %v1111_v43 = vpop.xlane.xlu1 %1110  ;;  %v1156_v6 = vmul.f32 1.442695, %v1136_v33 }
 0x3cd   : > { %1917 = vpow2.f32 %v1152_v1  ;;  %v1137_v45 = vsub.f32 %v2574_v18, %v1111_v43  ;;  %v1113_v47 = vpop.xlane.xlu0 %1112 }
 0x3ce   : > { %v1138_v7 = vsub.f32 %v2580_v20, %v1113_v47 }
 0x3cf   : > { %v2718_v48 = vpop.eup %1911  ;;  %v1158_v51 = vmul.f32 1.442695, %v1137_v45 }
 0x3d0   : > { %1182 = vadd.xlane.f32.xlu1 %v2718_v48  ;;  %v1115_v12 = vpop.xlane.xlu1 %1114  ;;  %v1160_v14 = vmul.f32 1.442695, %v1138_v7 }
 0x3d1   : > { %1919 = vpow2.f32 %v1158_v51  ;;  %v1139_v52 = vsub.f32 %v2588_v24, %v1115_v12  ;;  %v1117_v53 = vpop.xlane.xlu0 %1116 }
 0x3d2   : > { %1921 = vpow2.f32 %v1156_v6  ;;  %v1140_v54 = vsub.f32 %v2593_v27, %v1117_v53 }
 0x3d3   : > { %v2724_v18 = vpop.eup %1913  ;;  %v1162_v55 = vmul.f32 1.442695, %v1139_v52 }
 0x3d4   : > { %v2726_v56 = vpop.eup %1915  ;;  %1186 = vadd.xlane.f32.xlu1 %v2724_v18  ;;  %v1119_v20 = vpop.xlane.xlu1 %1118  ;;  %v1164_v2 = vmul.f32 1.442695, %v1140_v54 }
 0x3d5   : > { %1923 = vpow2.f32 %v1162_v55  ;;  %v1141_v61 = vsub.f32 %v2600_v32, %v1119_v20  ;;  %1180 = vadd.xlane.f32.xlu0 %v2726_v56  ;;  %v1121_v24 = vpop.xlane.xlu0 %1120 }
 0x3d6   : > { %1925 = vpow2.f32 %v1160_v14  ;;  %v1142_v4 = vsub.f32 %v2608_v37, %v1121_v24 }
 0x3d7   : > { %v2732_v27 = vpop.eup %1917  ;;  %v1166_v8 = vmul.f32 1.442695, %v1141_v61 }
 0x3d8   : > { %v1123_v9 = vpop.xlane.xlu1 %1122  ;;  %v1168_v32 = vmul.f32 1.442695, %v1142_v4 }
 0x3d9   : > { %1927 = vpow2.f32 %v1166_v8  ;;  %v1143_v0 = vsub.f32 %v2619_v44, %v1123_v9  ;;  %1184 = vadd.xlane.f32.xlu0 %v2732_v27  ;;  %v1125_v19 = vpop.xlane.xlu0 %1124 }
 0x3da   : > { %1929 = vpow2.f32 %v1164_v2  ;;  %v1144_v62 = vsub.f32 %v2628_v49, %v1125_v19 }
 0x3db   : > { %v2737_v21 = vpop.eup %1919  ;;  %v1170_v22 = vmul.f32 1.442695, %v1143_v0 }
 0x3dc   : > { %v2739_v5 = vpop.eup %1921  ;;  %1190 = vadd.xlane.f32.xlu1 %v2737_v21  ;;  %v1127_v37 = vpop.xlane.xlu1 %1126  ;;  %v1172_v25 = vmul.f32 1.442695, %v1144_v62 }
 0x3dd   : > { %1931 = vpow2.f32 %v1170_v22  ;;  %v1145_v23 = vsub.f32 %v2643_v57, %v1127_v37  ;;  %1188 = vadd.xlane.f32.xlu0 %v2739_v5  ;;  %v1129_v44 = vpop.xlane.xlu0 %1128 }
 0x3de   : > { %1933 = vpow2.f32 %v1168_v32  ;;  %v1146_v3 = vsub.f32 %v2651_v63, %v1129_v44 }
 0x3df   : > { %v2745_v49 = vpop.eup %1923  ;;  %v1174_v10 = vmul.f32 1.442695, %v1145_v23 }
 0x3e0   : > { %v2752_v26 = vpop.eup %1925  ;;  %1194 = vadd.xlane.f32.xlu1 %v2745_v49  ;;  %v1131_v57 = vpop.xlane.xlu1 %1130  ;;  %v1176_v28 = vmul.f32 1.442695, %v1146_v3 }
 0x3e1   : > { %1935 = vpow2.f32 %v1174_v10  ;;  %v1147_v11 = vsub.f32 %v2673_v13, %v1131_v57  ;;  %1192 = vadd.xlane.f32.xlu0 %v2752_v26  ;;  %v1033_v63 = vpop.xlane.xlu0 %1032 }
 0x3e2   : > { %1937 = vpow2.f32 %v1172_v25  ;;  %1065 = vst.msk [vmem:[%s2750_s14] sm:$0xff] %vm1064_vm0, %v1033_v63 }
 0x3e3   : > { %v2759_v29 = vpop.eup %1927  ;;  %v1178_v16 = vmul.f32 1.442695, %v1147_v11 }
 0x3e4   : > { %v2761_v30 = vpop.eup %1929  ;;  %1198 = vadd.xlane.f32.xlu1 %v2759_v29  ;;  %v1035_v31 = vpop.xlane.xlu1 %1034 }
 0x3e5   : > { %1939 = vpow2.f32 %v1178_v16  ;;  %1066 = vst.msk [vmem:[%s2750_s14 + $0x8] sm:$0xff] %vm1064_vm0, %v1035_v31  ;;  %1196 = vadd.xlane.f32.xlu0 %v2761_v30  ;;  %v1037_v13 = vpop.xlane.xlu0 %1036 }
 0x3e6   : > { %1941 = vpow2.f32 %v1176_v28  ;;  %1067 = vst.msk [vmem:[%s2750_s14 + $0x10] sm:$0xff] %vm1064_vm0, %v1037_v13 }
 0x3e7   : > { %v2769_v35 = vpop.eup %1931 }
 0x3e8   : > { %v2771_v36 = vpop.eup %1933  ;;  %1202 = vadd.xlane.f32.xlu1 %v2769_v35  ;;  %v1039_v17 = vpop.xlane.xlu1 %1038 }
 0x3e9   : > { %1068 = vst.msk [vmem:[%s2750_s14 + $0x18] sm:$0xff] %vm1064_vm0, %v1039_v17  ;;  %1200 = vadd.xlane.f32.xlu0 %v2771_v36  ;;  %v1041_v39 = vpop.xlane.xlu0 %1040 }
 0x3ea   : > { %1069 = vst.msk [vmem:[%s2750_s14 + $0x20] sm:$0xff] %vm1064_vm0, %v1041_v39 }
 0x3eb   : > { %v2779_v40 = vpop.eup %1935 }
 0x3ec   : > { %v2781_v41 = vpop.eup %1937  ;;  %1206 = vadd.xlane.f32.xlu1 %v2779_v40  ;;  %v1043_v42 = vpop.xlane.xlu1 %1042 }
 0x3ed   : > { %1070 = vst.msk [vmem:[%s2750_s14 + $0x28] sm:$0xff] %vm1064_vm0, %v1043_v42  ;;  %1204 = vadd.xlane.f32.xlu0 %v2781_v41  ;;  %v1045_v33 = vpop.xlane.xlu0 %1044 }
 0x3ee   : > { %1071 = vst.msk [vmem:[%s2750_s14 + $0x30] sm:$0xff] %vm1064_vm0, %v1045_v33 }
 0x3ef   : > { %v2789_v1 = vpop.eup %1939 }
 0x3f0   : > { %v2791_v43 = vpop.eup %1941  ;;  %1210 = vadd.xlane.f32.xlu1 %v2789_v1  ;;  %v1047_v45 = vpop.xlane.xlu1 %1046 }
 0x3f1   : > { %1072 = vst.msk [vmem:[%s2750_s14 + $0x38] sm:$0xff] %vm1064_vm0, %v1047_v45  ;;  %1208 = vadd.xlane.f32.xlu0 %v2791_v43 }
 0x3f4   : > { %1050 = vmax.xlane.f32.xlu1 %v2603_v34 }
 0x3f5   : > { %1048 = vmax.xlane.f32.xlu0 %v2611_v38 }
 0x3f8   : > { %1054 = vmax.xlane.f32.xlu1 %v2623_v46 }
 0x3f9   : > { %1052 = vmax.xlane.f32.xlu0 %v2631_v50 }
 0x3fc   : > { %1058 = vmax.xlane.f32.xlu1 %v2646_v58 }
 0x3fd   : > { %1056 = vmax.xlane.f32.xlu0 %v2656_v60 }
 0x400   : > { %1062 = vmax.xlane.f32.xlu1 %v2678_v15 }
 0x401   : > { %1060 = vmax.xlane.f32.xlu0 %v2687_v59 }
 0x45d   : > { %v1183_v47 = vpop.xlane.xlu1 %1182 }
 0x45e   : > { %1943 = vrcp.f32 %v1183_v47 }
 0x461   : > { %v1187_v6 = vpop.xlane.xlu1 %1186 }
 0x462   : > { %1945 = vrcp.f32 %v1187_v6  ;;  %v1181_v34 = vpop.xlane.xlu0 %1180 }
 0x463   : > { %1947 = vrcp.f32 %v1181_v34 }
 0x466   : > { %v1185_v38 = vpop.xlane.xlu0 %1184 }
 0x467   : > { %1949 = vrcp.f32 %v1185_v38 }
 0x468   : > { %v1944_v46 = vpop.eup %1943 }
 0x469   : > { %v1215_v50 = vmul.f32 %v1944_v46, %v2718_v48  ;;  %v1191_v7 = vpop.xlane.xlu1 %1190 }
 0x46a   : > { %1951 = vrcp.f32 %v1191_v7  ;;  %v1189_v58 = vpop.xlane.xlu0 %1188 }
 0x46b   : > { %1245 = vst [vmem:[%s2808_s15 + $0x8] sm:$0xff] %v1215_v50  ;;  %1953 = vrcp.f32 %v1189_v58 }
 0x46c   : > { %v1946_v60 = vpop.eup %1945 }
 0x46d   : > { %v1948_v15 = vpop.eup %1947  ;;  %v1219_v59 = vmul.f32 %v1946_v60, %v2724_v18  ;;  %v1195_v51 = vpop.xlane.xlu1 %1194 }
 0x46e   : > { %v1213_v12 = vmul.f32 %v1948_v15, %v2726_v56  ;;  %1955 = vrcp.f32 %v1195_v51  ;;  %v1193_v48 = vpop.xlane.xlu0 %1192 }
 0x46f   : > { %1247 = vst [vmem:[%s2808_s15 + $0x18] sm:$0xff] %v1219_v59  ;;  %1957 = vrcp.f32 %v1193_v48 }
 0x470   : > { %1244 = vst [vmem:[%s2808_s15] sm:$0xff] %v1213_v12 }
 0x471   : > { %v1950_v52 = vpop.eup %1949  ;;  %v1199_v53 = vpop.xlane.xlu1 %1198 }
 0x472   : > { %v1217_v14 = vmul.f32 %v1950_v52, %v2732_v27  ;;  %1959 = vrcp.f32 %v1199_v53  ;;  %v1197_v54 = vpop.xlane.xlu0 %1196 }
 0x473   : > { %1961 = vrcp.f32 %v1197_v54 }
 0x474   : > { %v1952_v55 = vpop.eup %1951  ;;  %1246 = vst [vmem:[%s2808_s15 + $0x10] sm:$0xff] %v1217_v14 }
 0x475   : > { %v1954_v18 = vpop.eup %1953  ;;  %v1223_v56 = vmul.f32 %v1952_v55, %v2737_v21  ;;  %v1203_v20 = vpop.xlane.xlu1 %1202 }
 0x476   : > { %v1221_v61 = vmul.f32 %v1954_v18, %v2739_v5  ;;  %1963 = vrcp.f32 %v1203_v20  ;;  %v1201_v24 = vpop.xlane.xlu0 %1200 }
 0x477   : > { %1249 = vst [vmem:[%s2808_s15 + $0x28] sm:$0xff] %v1223_v56  ;;  %1965 = vrcp.f32 %v1201_v24 }
 0x478   : > { %v1956_v2 = vpop.eup %1955  ;;  %1248 = vst [vmem:[%s2808_s15 + $0x20] sm:$0xff] %v1221_v61 }
 0x479   : > { %v1958_v4 = vpop.eup %1957  ;;  %v1227_v27 = vmul.f32 %v1956_v2, %v2745_v49  ;;  %v1207_v8 = vpop.xlane.xlu1 %1206 }
 0x47a   : > { %v1225_v9 = vmul.f32 %v1958_v4, %v2752_v26  ;;  %1967 = vrcp.f32 %v1207_v8  ;;  %v1205_v0 = vpop.xlane.xlu0 %1204 }
 0x47b   : > { %1251 = vst [vmem:[%s2808_s15 + $0x38] sm:$0xff] %v1227_v27  ;;  %1969 = vrcp.f32 %v1205_v0 }
 0x47c   : > { %v1960_v19 = vpop.eup %1959  ;;  %1250 = vst [vmem:[%s2808_s15 + $0x30] sm:$0xff] %v1225_v9 }
 0x47d   : > { %v1962_v32 = vpop.eup %1961  ;;  %v1231_v62 = vmul.f32 %v1960_v19, %v2759_v29  ;;  %v1211_v21 = vpop.xlane.xlu1 %1210 }
 0x47e   : > { %v1229_v22 = vmul.f32 %v1962_v32, %v2761_v30  ;;  %1971 = vrcp.f32 %v1211_v21  ;;  %v1209_v5 = vpop.xlane.xlu0 %1208 }
 0x47f   : > { %1253 = vst [vmem:[%s2808_s15 + $0x48] sm:$0xff] %v1231_v62  ;;  %1973 = vrcp.f32 %v1209_v5 }
 0x480   : > { %v1964_v37 = vpop.eup %1963  ;;  %1252 = vst [vmem:[%s2808_s15 + $0x40] sm:$0xff] %v1229_v22 }
 0x481   : > { %v1966_v23 = vpop.eup %1965  ;;  %v1235_v44 = vmul.f32 %v1964_v37, %v2769_v35  ;;  %v1051_v25 = vpop.xlane.xlu1 %1050 }
 0x482   : > { %v1233_v3 = vmul.f32 %v1966_v23, %v2771_v36  ;;  %1074 = vst.msk [vmem:[%s2750_s14 + $0x48] sm:$0xff] %vm1064_vm0, %v1051_v25  ;;  %v1049_v49 = vpop.xlane.xlu0 %1048 }
 0x483   : > { %1255 = vst [vmem:[%s2808_s15 + $0x58] sm:$0xff] %v1235_v44  ;;  %1073 = vst.msk [vmem:[%s2750_s14 + $0x40] sm:$0xff] %vm1064_vm0, %v1049_v49 }
 0x484   : > { %v1968_v10 = vpop.eup %1967  ;;  %1254 = vst [vmem:[%s2808_s15 + $0x50] sm:$0xff] %v1233_v3 }
 0x485   : > { %v1970_v26 = vpop.eup %1969  ;;  %v1239_v57 = vmul.f32 %v1968_v10, %v2779_v40  ;;  %v1055_v11 = vpop.xlane.xlu1 %1054 }
 0x486   : > { %v1237_v63 = vmul.f32 %v1970_v26, %v2781_v41  ;;  %1076 = vst.msk [vmem:[%s2750_s14 + $0x58] sm:$0xff] %vm1064_vm0, %v1055_v11  ;;  %v1053_v28 = vpop.xlane.xlu0 %1052 }
 0x487   : > { %1257 = vst [vmem:[%s2808_s15 + $0x68] sm:$0xff] %v1239_v57  ;;  %1075 = vst.msk [vmem:[%s2750_s14 + $0x50] sm:$0xff] %vm1064_vm0, %v1053_v28 }
 0x488   : > { %v1972_v29 = vpop.eup %1971  ;;  %1256 = vst [vmem:[%s2808_s15 + $0x60] sm:$0xff] %v1237_v63 }
 0x489   : > { %v1974_v16 = vpop.eup %1973  ;;  %v1243_v30 = vmul.f32 %v1972_v29, %v2789_v1  ;;  %v1059_v31 = vpop.xlane.xlu1 %1058 }
 0x48a   : > { %v1241_v13 = vmul.f32 %v1974_v16, %v2791_v43  ;;  %1078 = vst.msk [vmem:[%s2750_s14 + $0x68] sm:$0xff] %vm1064_vm0, %v1059_v31  ;;  %v1057_v35 = vpop.xlane.xlu0 %1056 }
 0x48b   : > { %1259 = vst [vmem:[%s2808_s15 + $0x78] sm:$0xff] %v1243_v30  ;;  %1077 = vst.msk [vmem:[%s2750_s14 + $0x60] sm:$0xff] %vm1064_vm0, %v1057_v35 }
 0x48c   : > { %1258 = vst [vmem:[%s2808_s15 + $0x70] sm:$0xff] %v1241_v13 }
 0x48d   : > { %v1063_v36 = vpop.xlane.xlu1 %1062 }
 0x48e   : > { %2102 = shalt.err (!%p2099_p9)
}
 0x48f   : > { %s2103_s24 = scalar_lea.hbm %s2851_s19, 2048  ;;  %s2107_s15 = scalar_lea.hbm %s2915_s7, 4096 }
 0x490   : > { %p2104_p0 = scmp.ne.s32.totalorder %s2851_s19, %s2103_s24  ;;  %p2108_p13 = scmp.lt.u32.totalorder %s2851_s19, %s2915_s7 }
 0x491   : > { %p2109_p6 = scmp.lt.u32.totalorder %s2107_s15, %s2103_s24  ;;  %p2111_p3 = scmp.lt.u32.totalorder %s2103_s24, %s2851_s19 }
 0x492   : > { %p2105_p11 = pnand %p2104_p0, %p2374_p5 }
 0x493   : > { %p2110_p10 = por %p2109_p6, %p2108_p13 }
 0x494   : > { %p2106_p8 = pneg %p2105_p11 }
 0x495   : > { %p2112_p7 = por %p2111_p3, %p2110_p10 }
 0x497   : > { %p2113_p12 = pnand %p2112_p7, %p2106_p8 }
 0x499   : > { %2116 = shalt.err (!%p2113_p12)
}
 0x49a   : > { %s2173_s13 = smov 128   ;;  %s2174_s21 = smov 8   ;;  %1080 = vst.msk [vmem:[%s2750_s14 + $0x78] sm:$0xff] %vm1064_vm0, %v1063_v36  ;;  %v1061_v17 = vpop.xlane.xlu0 %1060 }
 0x49b   : > { %1843 = dma.vmem_to_hbm [thread:$0]  (%p2374_p5), %s2853_s27, 2048, %s2851_s19, %s1261_s9, %s2173_s13, %s2173_s13, %s2174_s21  }
 0x49c   : > { %1079 = vst.msk [vmem:[%s2750_s14 + $0x70] sm:$0xff] %vm1064_vm0, %v1061_v17 }
 0x49d PF: > { %s2944_s17 = sld [smem:[#allocation15_spill]]  ;;  %s2945_s18 = sld [smem:[#allocation16_spill]] }
 0x49e   : > { %p2947_p2 = scmp.ge.s32.totalorder %s2163_s30, 2 }
 0x4a3   : > { %s1298_s16 = sand.u32 1, %s2944_s17   ;;  %p2946_p1 = scmp.ne.s32.totalorder %s2945_s18, 0 }
 0x4a4   : > { %s1299_s24 = scalar_lea.sflag [#allocation4], %s1298_s16 }
 0x4a5   : > { %p1860_p4 = pnand %p2947_p2, %p2946_p1 }
 0x4a7   : > { %2146 = dma.done.wait (!%p1860_p4), %s1299_s24, 2048  }
 0x4a8   : > { %2148 = vsyncadd (!%p1860_p4), %s1299_s24, 4294965248  ;;  %p24_p5 = scmp.ge.s32.totalorder %s2360_s26, 4   ;;  %s2948_s27 = smov %s2155_s28 }
 0x4a9   : > { %s2949_s28 = smov %s2159_s29  ;;  %s2950_s29 = smov %s2370_s22 }
 0x4aa   : > { %s2951_s30 = smov %s2360_s26  ;;  %26 = sbr.rel (!%p24_p5) target bundleno = 7 (0x7), region = 117 }
 0x4b1   :  { %1312 = vsyncpa [#allocation3], 1 }
 0x4b2   :  { %1314 = vsyncpa [#allocation3 + $0x1], 1 }
 0x4b3   :  { %1315 = vsyncpa [#allocation6], 1 }
 0x4b4   :  { %1316 = vsyncpa [#allocation9], 1 }
 0x4b5   :  { %1317 = vsyncpa [#allocation4], 1 }
 0x4b6   :  { %1319 = vsyncpa [#allocation4 + $0x1], 1 }

</bundles_post_ra>
